<compile_context>
chip_gen: v7x
topology: tpu7x:2x2x1
jax: 0.10.0
libtpu: 0.0.40
codegen_flags: <defaults>
</compile_context>

<pallas_src>
import jax
import jax.numpy as jnp
import numpy as np
from jax.experimental import pallas as pl
from jax.experimental.pallas import tpu as pltpu


# ----------------------------------------------------------------------------
# Fused bidirectional recurrent kernel for one layer.
# grid = (num_chunks,), "arbitrary": grid step c processes
#   forward  : time chunk c              (local steps 0..CHUNK-1)
#   backward : time chunk nc-1-c         (local steps CHUNK-1..0)
# h/c state for both directions lives in VMEM scratch across grid steps.
# The output block is the FULL (Tp, B, 2H) array (resident accumulator).
# ----------------------------------------------------------------------------
def _bilstm_chunk_kernel(gxf_ref, gxb_ref, mf_ref, mb_ref, uf_ref, ub_ref,
                         o_ref, hf, cf, hb, cb):
    c = pl.program_id(0)
    nc = pl.num_programs(0)
    chunk = gxf_ref.shape[0]
    H = hf.shape[1]

    @pl.when(c == 0)
    def _():
        hf[...] = jnp.zeros_like(hf)
        cf[...] = jnp.zeros_like(cf)
        hb[...] = jnp.zeros_like(hb)
        cb[...] = jnp.zeros_like(cb)

    def cell(gates, c_prev):
        # PyTorch gate order: i, f, g, o
        i_g = jax.nn.sigmoid(gates[:, 0 * H:1 * H])
        f_g = jax.nn.sigmoid(gates[:, 1 * H:2 * H])
        g_g = jnp.tanh(gates[:, 2 * H:3 * H])
        o_g = jax.nn.sigmoid(gates[:, 3 * H:4 * H])
        c_new = f_g * c_prev + i_g * g_g
        h_new = o_g * jnp.tanh(c_new)
        return h_new, c_new

    def step(s, carry):
        # ---- forward direction: local step s, global time c*chunk + s ----
        gf = gxf_ref[s] + jnp.dot(hf[...], uf_ref[...],
                                  preferred_element_type=jnp.float32)
        h_new, c_new = cell(gf, cf[...])
        m = mf_ref[s]                                # (B, 1)
        hfm = m * h_new                              # masked h, reused twice
        hf[...] = hfm
        cf[...] = m * c_new
        o_ref[c * chunk + s, :, :H] = hfm.astype(o_ref.dtype)

        # ---- backward direction: local step chunk-1-s inside chunk nc-1-c,
        #      global time (nc-1-c)*chunk + (chunk-1-s) ----------------------
        sr = chunk - 1 - s
        gb = gxb_ref[sr] + jnp.dot(hb[...], ub_ref[...],
                                   preferred_element_type=jnp.float32)
        hb_new, cb_new = cell(gb, cb[...])
        mb = mb_ref[sr]
        hbm = mb * hb_new
        hb[...] = hbm
        cb[...] = mb * cb_new
        o_ref[(nc - 1 - c) * chunk + sr, :, H:] = hbm.astype(o_ref.dtype)
        return carry

    jax.lax.fori_loop(0, chunk, step, 0, unroll=True)


def _bilstm_layer(gxf, gxb, mask, Uf, Ub, *, chunk):
    """One fused bidirectional LSTM layer over the precomputed gate slabs.

    gxf, gxb: (Tp, B, 4H) float32 -- x@W + b, per direction (bias included)
    mask:     (Tp, B, 1)  float32 -- 1.0 if t < length else 0.0
    Uf, Ub:   (H, 4H)     float32 -- recurrent weights, per direction
    returns   (Tp, B, 2H) float32 -- [fwd | bwd], zeros at padded positions
    """
    Tp, B, G = gxf.shape
    H = Uf.shape[0]
    nc = Tp // chunk

    grid_spec = pltpu.PrefetchScalarGridSpec(
        num_scalar_prefetch=0,
        grid=(nc,),
        in_specs=[
            pl.BlockSpec((chunk, B, G), lambda c: (c, 0, 0)),           # gxf
            pl.BlockSpec((chunk, B, G), lambda c: (nc - 1 - c, 0, 0)),  # gxb
            pl.BlockSpec((chunk, B, 1), lambda c: (c, 0, 0)),           # mask f
            pl.BlockSpec((chunk, B, 1), lambda c: (nc - 1 - c, 0, 0)),  # mask b
            pl.BlockSpec((H, G), lambda c: (0, 0)),                     # Uf
            pl.BlockSpec((H, G), lambda c: (0, 0)),                     # Ub
        ],
        # Full-array resident output: written in pieces each grid step, one
        # dense HBM writeback at the end.
        out_specs=pl.BlockSpec((Tp, B, 2 * H), lambda c: (0, 0, 0)),
        scratch_shapes=[pltpu.VMEM((B, H), jnp.float32)
                        for _ in range(4)],  # hf, cf, hb, cb
    )
    return pl.pallas_call(
        _bilstm_chunk_kernel,
        out_shape=jax.ShapeDtypeStruct((Tp, B, 2 * H), jnp.float32),
        grid_spec=grid_spec,
        compiler_params=pltpu.CompilerParams(
            dimension_semantics=("arbitrary",)),
    )(gxf, gxb, mask, mask, Uf, Ub)


# ----------------------------------------------------------------------------
# Full LSTMEncoder forward (bidirectional, multi-layer, length-masked).
# ----------------------------------------------------------------------------
def lstm_encoder_forward(x_btd, x_len, params, *, chunk=8):
    """x_btd: (B, T, in_size), x_len: (B,) int32.  Returns (B, T, out_size)."""
    B, T, _ = x_btd.shape
    nc = -(-T // chunk)
    Tp = nc * chunk

    h = jnp.transpose(x_btd, (1, 0, 2)).astype(jnp.float32)      # (T, B, D)
    if Tp != T:
        h = jnp.pad(h, ((0, Tp - T), (0, 0), (0, 0)))            # (Tp, B, D)
    mask = (jnp.arange(Tp)[:, None] < x_len[None, :]).astype(jnp.float32)
    mask = mask[:, :, None]                                      # (Tp, B, 1)

    for layer in params:
        H = layer["Uf"].shape[0]
        # Hoisted input projection: ONE large MXU-friendly matmul for both
        # directions, bias folded in here (added exactly once).
        W_cat = jnp.concatenate([layer["Wf"], layer["Wb"]], axis=1)  # (D, 8H)
        b_cat = jnp.concatenate([layer["bf"], layer["bb"]], axis=1)  # (1, 8H)
        g_all = jnp.einsum("tbd,dg->tbg", h, W_cat,
                           preferred_element_type=jnp.float32) + b_cat
        gxf = g_all[..., :4 * H]
        gxb = g_all[..., 4 * H:]
        h = _bilstm_layer(gxf, gxb, mask, layer["Uf"], layer["Ub"],
                          chunk=chunk)                           # (Tp, B, 2H)
        # inter-layer LSTM dropout: identity in eval mode

    out = jnp.transpose(h[:T], (1, 0, 2))                        # (B, T, 2H)
    # final self.dropout: identity in eval mode
    return out


# ----------------------------------------------------------------------------
# Pure-JAX reference (same masked-recurrence math) for a correctness check.
# ----------------------------------------------------------------------------
def _ref_direction(x_tbd, lengths, W, U, b, *, reverse):
    T, B, _ = x_tbd.shape
    H = U.shape[0]
    xs = jnp.flip(x_tbd, axis=0) if reverse else x_tbd
    ts = jnp.flip(jnp.arange(T), axis=0) if reverse else jnp.arange(T)

    def step(carry, inp):
        h, c = carry
        x_t, t = inp
        gates = x_t @ W + h @ U + b
        i_g = jax.nn.sigmoid(gates[:, 0 * H:1 * H])
        f_g = jax.nn.sigmoid(gates[:, 1 * H:2 * H])
        g_g = jnp.tanh(gates[:, 2 * H:3 * H])
        o_g = jax.nn.sigmoid(gates[:, 3 * H:4 * H])
        c_new = f_g * c + i_g * g_g
        h_new = o_g * jnp.tanh(c_new)
        m = (t < lengths).astype(jnp.float32)[:, None]
        return (m * h_new, m * c_new), m * h_new

    init = (jnp.zeros((B, H), jnp.float32), jnp.zeros((B, H), jnp.float32))
    _, ys = jax.lax.scan(step, init, (xs, ts))
    return jnp.flip(ys, axis=0) if reverse else ys


def lstm_encoder_ref(x_btd, x_len, params):
    h = jnp.transpose(x_btd, (1, 0, 2)).astype(jnp.float32)
    for layer in params:
        fwd = _ref_direction(h, x_len, layer["Wf"], layer["Uf"], layer["bf"],
                             reverse=False)
        bwd = _ref_direction(h, x_len, layer["Wb"], layer["Ub"], layer["bb"],
                             reverse=True)
        h = jnp.concatenate([fwd, bwd], axis=-1)
    return jnp.transpose(h, (1, 0, 2))


# ----------------------------------------------------------------------------
# Deterministic parameter init (PyTorch nn.LSTM-style uniform(-1/sqrt(H), +)).
# ----------------------------------------------------------------------------
def init_params(key, in_size, out_size, num_layers):
    H = out_size // 2
    k = 1.0 / np.sqrt(H)
    params = []
    for layer in range(num_layers):
        d_in = in_size if layer == 0 else 2 * H
        layer_p = {}
        for tag in ("f", "b"):  # forward / backward direction
            key, k1, k2, k3, k4 = jax.random.split(key, 5)
            W_ih = jax.random.uniform(k1, (4 * H, d_in), jnp.float32, -k, k)
            W_hh = jax.random.uniform(k2, (4 * H, H), jnp.float32, -k, k)
            b_ih = jax.random.uniform(k3, (4 * H,), jnp.float32, -k, k)
            b_hh = jax.random.uniform(k4, (4 * H,), jnp.float32, -k, k)
            layer_p["W" + tag] = W_ih.T                      # (d_in, 4H)
            layer_p["U" + tag] = W_hh.T                      # (H, 4H)
            layer_p["b" + tag] = (b_ih + b_hh)[None, :]      # (1, 4H)
        params.append(layer_p)
    return params


if __name__ == "__main__":
    # T=12 is deliberately not a multiple of the chunk size (8) so the
    # padding + multi-chunk + reversed-backward-chunk paths are exercised.
    B, T, in_size, out_size, num_layers = 2, 12, 16, 32, 2

    key = jax.random.PRNGKey(0)
    key, kx = jax.random.split(key)
    x = jax.random.normal(kx, (B, T, in_size), jnp.float32)
    x_len = jnp.array([12, 7], dtype=jnp.int32)
    params = init_params(key, in_size, out_size, num_layers)

    out = jax.jit(lstm_encoder_forward)(x, x_len, params)
    out = jax.block_until_ready(out)

    ref = jax.block_until_ready(lstm_encoder_ref(x, x_len, params))
    assert out.shape == (B, T, out_size)
    np.testing.assert_allclose(np.asarray(out), np.asarray(ref),
                               rtol=1e-4, atol=1e-4)
    print("KERNEL_OK")
</pallas_src>

<mosaic_0001>
module attributes {stable_mosaic.version = 11 : i64} {
  func.func @_bilstm_chunk_kernel(%arg0: i32, %arg1: memref<8x2x64xf32, #tpu.memory_space<vmem>>, %arg2: memref<8x2x64xf32, #tpu.memory_space<vmem>>, %arg3: memref<8x2x1xf32, #tpu.memory_space<vmem>>, %arg4: memref<8x2x1xf32, #tpu.memory_space<vmem>>, %arg5: memref<16x64xf32, #tpu.memory_space<vmem>>, %arg6: memref<16x64xf32, #tpu.memory_space<vmem>>, %arg7: memref<16x2x32xf32, #tpu.memory_space<vmem>>, %arg8: memref<2x16xf32, #tpu.memory_space<vmem>>, %arg9: memref<2x16xf32, #tpu.memory_space<vmem>>, %arg10: memref<2x16xf32, #tpu.memory_space<vmem>>, %arg11: memref<2x16xf32, #tpu.memory_space<vmem>>) attributes {dimension_semantics = [#tpu.dimension_semantics<arbitrary>], iteration_bounds = array<i64: 2>, scalar_prefetch = 0 : i64, scratch_operands = 4 : i64, tpu.core_type = #tpu.core_type<tc>, window_params = [{transform_indices = @transform_0, window_bounds = array<i64: 8, 2, 64>}, {transform_indices = @transform_1, window_bounds = array<i64: 8, 2, 64>}, {transform_indices = @transform_2, window_bounds = array<i64: 8, 2, 1>}, {transform_indices = @transform_3, window_bounds = array<i64: 8, 2, 1>}, {pipeline_mode = #tpu.pipeline_mode<synchronous>, transform_indices = @transform_4, window_bounds = array<i64: 16, 64>}, {pipeline_mode = #tpu.pipeline_mode<synchronous>, transform_indices = @transform_5, window_bounds = array<i64: 16, 64>}, {pipeline_mode = #tpu.pipeline_mode<synchronous>, transform_indices = @transform_6, window_bounds = array<i64: 16, 2, 32>}]} {
    %c0_i32 = arith.constant 0 : i32
    %0 = arith.cmpi eq, %arg0, %c0_i32 : i32
    %1 = arith.extui %0 : i1 to i32
    %c0_i32_0 = arith.constant 0 : i32
    %2 = arith.cmpi ne, %1, %c0_i32_0 : i32
    scf.if %2 {
      %cst_351 = arith.constant 0.000000e+00 : f32
      %787 = vector.broadcast %cst_351 : f32 to vector<2x16xf32>
      %c0_352 = arith.constant 0 : index
      %c0_353 = arith.constant 0 : index
      %788 = vector.load %arg8[%c0_352, %c0_353] : memref<2x16xf32, #tpu.memory_space<vmem>>, vector<2x16xf32>
      tpu.vector_store %arg8[%c0_352, %c0_353], %787 {strides = array<i32>} : memref<2x16xf32, #tpu.memory_space<vmem>>, vector<2x16xf32>,
      %cst_354 = arith.constant 0.000000e+00 : f32
      %789 = vector.broadcast %cst_354 : f32 to vector<2x16xf32>
      %c0_355 = arith.constant 0 : index
      %c0_356 = arith.constant 0 : index
      %790 = vector.load %arg9[%c0_355, %c0_356] : memref<2x16xf32, #tpu.memory_space<vmem>>, vector<2x16xf32>
      tpu.vector_store %arg9[%c0_355, %c0_356], %789 {strides = array<i32>} : memref<2x16xf32, #tpu.memory_space<vmem>>, vector<2x16xf32>,
      %cst_357 = arith.constant 0.000000e+00 : f32
      %791 = vector.broadcast %cst_357 : f32 to vector<2x16xf32>
      %c0_358 = arith.constant 0 : index
      %c0_359 = arith.constant 0 : index
      %792 = vector.load %arg10[%c0_358, %c0_359] : memref<2x16xf32, #tpu.memory_space<vmem>>, vector<2x16xf32>
      tpu.vector_store %arg10[%c0_358, %c0_359], %791 {strides = array<i32>} : memref<2x16xf32, #tpu.memory_space<vmem>>, vector<2x16xf32>,
      %cst_360 = arith.constant 0.000000e+00 : f32
      %793 = vector.broadcast %cst_360 : f32 to vector<2x16xf32>
      %c0_361 = arith.constant 0 : index
      %c0_362 = arith.constant 0 : index
      %794 = vector.load %arg11[%c0_361, %c0_362] : memref<2x16xf32, #tpu.memory_space<vmem>>, vector<2x16xf32>
      tpu.vector_store %arg11[%c0_361, %c0_362], %793 {strides = array<i32>} : memref<2x16xf32, #tpu.memory_space<vmem>>, vector<2x16xf32>,
    } else {
    }
    %c0_i32_1 = arith.constant 0 : i32
    %3 = arith.index_cast %c0_i32_1 : i32 to index
    %c0 = arith.constant 0 : index
    %c0_2 = arith.constant 0 : index
    %4 = vector.load %arg1[%3, %c0, %c0_2] : memref<8x2x64xf32, #tpu.memory_space<vmem>>, vector<1x2x64xf32>
    %5 = vector.shape_cast %4 : vector<1x2x64xf32> to vector<2x64xf32>
    %c0_3 = arith.constant 0 : index
    %c0_4 = arith.constant 0 : index
    %6 = vector.load %arg8[%c0_3, %c0_4] : memref<2x16xf32, #tpu.memory_space<vmem>>, vector<2x16xf32>
    %c0_5 = arith.constant 0 : index
    %c0_6 = arith.constant 0 : index
    %7 = vector.load %arg5[%c0_5, %c0_6] : memref<16x64xf32, #tpu.memory_space<vmem>>, vector<16x64xf32>
    %cst = arith.constant dense<0.000000e+00> : vector<2x64xf32>
    %8 = tpu.matmul %6, %7, %cst {dimension_numbers = #tpu.dot_dimension_numbers<[1], [0], [0], [1], [0, 0, 1, 1], [], []>} : vector<2x16xf32>, vector<16x64xf32>, vector<2x64xf32> -> vector<2x64xf32>
    %9 = arith.addf %5, %8 : vector<2x64xf32>
    %c0_7 = arith.constant 0 : index
    %c0_8 = arith.constant 0 : index
    %10 = vector.load %arg9[%c0_7, %c0_8] : memref<2x16xf32, #tpu.memory_space<vmem>>, vector<2x16xf32>
    %11 = vector.extract_strided_slice %9 {offsets = [0, 0], sizes = [2, 16], strides = [1, 1]} : vector<2x64xf32> to vector<2x16xf32>
    %12 = arith.negf %11 : vector<2x16xf32>
    %13 = math.exp %12 : vector<2x16xf32>
    %cst_9 = arith.constant 1.000000e+00 : f32
    %14 = vector.broadcast %cst_9 : f32 to vector<2x16xf32>
    %15 = arith.addf %14, %13 : vector<2x16xf32>
    %16 = arith.divf %14, %15 : vector<2x16xf32>
    %17 = vector.extract_strided_slice %9 {offsets = [0, 16], sizes = [2, 16], strides = [1, 1]} : vector<2x64xf32> to vector<2x16xf32>
    %18 = arith.negf %17 : vector<2x16xf32>
    %19 = math.exp %18 : vector<2x16xf32>
    %cst_10 = arith.constant 1.000000e+00 : f32
    %20 = vector.broadcast %cst_10 : f32 to vector<2x16xf32>
    %21 = arith.addf %20, %19 : vector<2x16xf32>
    %22 = arith.divf %20, %21 : vector<2x16xf32>
    %23 = vector.extract_strided_slice %9 {offsets = [0, 32], sizes = [2, 16], strides = [1, 1]} : vector<2x64xf32> to vector<2x16xf32>
    %24 = math.tanh %23 : vector<2x16xf32>
    %25 = vector.extract_strided_slice %9 {offsets = [0, 48], sizes = [2, 16], strides = [1, 1]} : vector<2x64xf32> to vector<2x16xf32>
    %26 = arith.negf %25 : vector<2x16xf32>
    %27 = math.exp %26 : vector<2x16xf32>
    %cst_11 = arith.constant 1.000000e+00 : f32
    %28 = vector.broadcast %cst_11 : f32 to vector<2x16xf32>
    %29 = arith.addf %28, %27 : vector<2x16xf32>
    %30 = arith.divf %28, %29 : vector<2x16xf32>
    %31 = arith.mulf %22, %10 : vector<2x16xf32>
    %32 = arith.mulf %16, %24 : vector<2x16xf32>
    %33 = arith.addf %31, %32 : vector<2x16xf32>
    %34 = math.tanh %33 : vector<2x16xf32>
    %35 = arith.mulf %30, %34 : vector<2x16xf32>
    %36 = arith.index_cast %c0_i32_1 : i32 to index
    %c0_12 = arith.constant 0 : index
    %c0_13 = arith.constant 0 : index
    %37 = vector.load %arg3[%36, %c0_12, %c0_13] : memref<8x2x1xf32, #tpu.memory_space<vmem>>, vector<1x2x1xf32>
    %38 = vector.shape_cast %37 : vector<1x2x1xf32> to vector<2x1xf32>
    %39 = vector.broadcast %38 : vector<2x1xf32> to vector<2x16xf32>
    %40 = arith.mulf %39, %35 : vector<2x16xf32>
    %c0_14 = arith.constant 0 : index
    %c0_15 = arith.constant 0 : index
    %41 = vector.load %arg8[%c0_14, %c0_15] : memref<2x16xf32, #tpu.memory_space<vmem>>, vector<2x16xf32>
    tpu.vector_store %arg8[%c0_14, %c0_15], %40 {strides = array<i32>} : memref<2x16xf32, #tpu.memory_space<vmem>>, vector<2x16xf32>,
    %42 = vector.broadcast %38 : vector<2x1xf32> to vector<2x16xf32>
    %43 = arith.mulf %42, %33 : vector<2x16xf32>
    %c0_16 = arith.constant 0 : index
    %c0_17 = arith.constant 0 : index
    %44 = vector.load %arg9[%c0_16, %c0_17] : memref<2x16xf32, #tpu.memory_space<vmem>>, vector<2x16xf32>
    tpu.vector_store %arg9[%c0_16, %c0_17], %43 {strides = array<i32>} : memref<2x16xf32, #tpu.memory_space<vmem>>, vector<2x16xf32>,
    %c8_i32 = arith.constant 8 : i32
    %45 = arith.muli %arg0, %c8_i32 : i32
    %46 = arith.addi %45, %c0_i32_1 : i32
    %47 = arith.index_cast %46 : i32 to index
    %c0_18 = arith.constant 0 : index
    %c0_19 = arith.constant 0 : index
    %48 = vector.load %arg7[%47, %c0_18, %c0_19] : memref<16x2x32xf32, #tpu.memory_space<vmem>>, vector<1x2x16xf32>
    %49 = vector.shape_cast %48 : vector<1x2x16xf32> to vector<2x16xf32>
    %50 = vector.shape_cast %40 : vector<2x16xf32> to vector<1x2x16xf32>
    tpu.vector_store %arg7[%47, %c0_18, %c0_19], %50 {strides = array<i32>} : memref<16x2x32xf32, #tpu.memory_space<vmem>>, vector<1x2x16xf32>,
    %c7_i32 = arith.constant 7 : i32
    %51 = arith.subi %c7_i32, %c0_i32_1 : i32
    %52 = arith.index_cast %51 : i32 to index
    %c0_20 = arith.constant 0 : index
    %c0_21 = arith.constant 0 : index
    %53 = vector.load %arg2[%52, %c0_20, %c0_21] : memref<8x2x64xf32, #tpu.memory_space<vmem>>, vector<1x2x64xf32>
    %54 = vector.shape_cast %53 : vector<1x2x64xf32> to vector<2x64xf32>
    %c0_22 = arith.constant 0 : index
    %c0_23 = arith.constant 0 : index
    %55 = vector.load %arg10[%c0_22, %c0_23] : memref<2x16xf32, #tpu.memory_space<vmem>>, vector<2x16xf32>
    %c0_24 = arith.constant 0 : index
    %c0_25 = arith.constant 0 : index
    %56 = vector.load %arg6[%c0_24, %c0_25] : memref<16x64xf32, #tpu.memory_space<vmem>>, vector<16x64xf32>
    %cst_26 = arith.constant dense<0.000000e+00> : vector<2x64xf32>
    %57 = tpu.matmul %55, %56, %cst_26 {dimension_numbers = #tpu.dot_dimension_numbers<[1], [0], [0], [1], [0, 0, 1, 1], [], []>} : vector<2x16xf32>, vector<16x64xf32>, vector<2x64xf32> -> vector<2x64xf32>
    %58 = arith.addf %54, %57 : vector<2x64xf32>
    %c0_27 = arith.constant 0 : index
    %c0_28 = arith.constant 0 : index
    %59 = vector.load %arg11[%c0_27, %c0_28] : memref<2x16xf32, #tpu.memory_space<vmem>>, vector<2x16xf32>
    %60 = vector.extract_strided_slice %58 {offsets = [0, 0], sizes = [2, 16], strides = [1, 1]} : vector<2x64xf32> to vector<2x16xf32>
    %61 = arith.negf %60 : vector<2x16xf32>
    %62 = math.exp %61 : vector<2x16xf32>
    %cst_29 = arith.constant 1.000000e+00 : f32
    %63 = vector.broadcast %cst_29 : f32 to vector<2x16xf32>
    %64 = arith.addf %63, %62 : vector<2x16xf32>
    %65 = arith.divf %63, %64 : vector<2x16xf32>
    %66 = vector.extract_strided_slice %58 {offsets = [0, 16], sizes = [2, 16], strides = [1, 1]} : vector<2x64xf32> to vector<2x16xf32>
    %67 = arith.negf %66 : vector<2x16xf32>
    %68 = math.exp %67 : vector<2x16xf32>
    %cst_30 = arith.constant 1.000000e+00 : f32
    %69 = vector.broadcast %cst_30 : f32 to vector<2x16xf32>
    %70 = arith.addf %69, %68 : vector<2x16xf32>
    %71 = arith.divf %69, %70 : vector<2x16xf32>
    %72 = vector.extract_strided_slice %58 {offsets = [0, 32], sizes = [2, 16], strides = [1, 1]} : vector<2x64xf32> to vector<2x16xf32>
    %73 = math.tanh %72 : vector<2x16xf32>
    %74 = vector.extract_strided_slice %58 {offsets = [0, 48], sizes = [2, 16], strides = [1, 1]} : vector<2x64xf32> to vector<2x16xf32>
    %75 = arith.negf %74 : vector<2x16xf32>
    %76 = math.exp %75 : vector<2x16xf32>
    %cst_31 = arith.constant 1.000000e+00 : f32
    %77 = vector.broadcast %cst_31 : f32 to vector<2x16xf32>
    %78 = arith.addf %77, %76 : vector<2x16xf32>
    %79 = arith.divf %77, %78 : vector<2x16xf32>
    %80 = arith.mulf %71, %59 : vector<2x16xf32>
    %81 = arith.mulf %65, %73 : vector<2x16xf32>
    %82 = arith.addf %80, %81 : vector<2x16xf32>
    %83 = math.tanh %82 : vector<2x16xf32>
    %84 = arith.mulf %79, %83 : vector<2x16xf32>
    %85 = arith.index_cast %51 : i32 to index
    %c0_32 = arith.constant 0 : index
    %c0_33 = arith.constant 0 : index
    %86 = vector.load %arg4[%85, %c0_32, %c0_33] : memref<8x2x1xf32, #tpu.memory_space<vmem>>, vector<1x2x1xf32>
    %87 = vector.shape_cast %86 : vector<1x2x1xf32> to vector<2x1xf32>
    %88 = vector.broadcast %87 : vector<2x1xf32> to vector<2x16xf32>
    %89 = arith.mulf %88, %84 : vector<2x16xf32>
    %c0_34 = arith.constant 0 : index
    %c0_35 = arith.constant 0 : index
    %90 = vector.load %arg10[%c0_34, %c0_35] : memref<2x16xf32, #tpu.memory_space<vmem>>, vector<2x16xf32>
    tpu.vector_store %arg10[%c0_34, %c0_35], %89 {strides = array<i32>} : memref<2x16xf32, #tpu.memory_space<vmem>>, vector<2x16xf32>,
    %91 = vector.broadcast %87 : vector<2x1xf32> to vector<2x16xf32>
    %92 = arith.mulf %91, %82 : vector<2x16xf32>
    %c0_36 = arith.constant 0 : index
    %c0_37 = arith.constant 0 : index
    %93 = vector.load %arg11[%c0_36, %c0_37] : memref<2x16xf32, #tpu.memory_space<vmem>>, vector<2x16xf32>
    tpu.vector_store %arg11[%c0_36, %c0_37], %92 {strides = array<i32>} : memref<2x16xf32, #tpu.memory_space<vmem>>, vector<2x16xf32>,
    %c1_i32 = arith.constant 1 : i32
    %94 = arith.subi %c1_i32, %arg0 : i32
    %c8_i32_38 = arith.constant 8 : i32
    %95 = arith.muli %94, %c8_i32_38 : i32
    %96 = arith.addi %95, %51 : i32
    %97 = arith.index_cast %96 : i32 to index
    %c0_39 = arith.constant 0 : index
    %c16 = arith.constant 16 : index
    %98 = vector.load %arg7[%97, %c0_39, %c16] : memref<16x2x32xf32, #tpu.memory_space<vmem>>, vector<1x2x16xf32>
    %99 = vector.shape_cast %98 : vector<1x2x16xf32> to vector<2x16xf32>
    %100 = vector.shape_cast %89 : vector<2x16xf32> to vector<1x2x16xf32>
    tpu.vector_store %arg7[%97, %c0_39, %c16], %100 {strides = array<i32>} : memref<16x2x32xf32, #tpu.memory_space<vmem>>, vector<1x2x16xf32>,
    %c1_i32_40 = arith.constant 1 : i32
    %101 = arith.index_cast %c1_i32_40 : i32 to index
    %c0_41 = arith.constant 0 : index
    %c0_42 = arith.constant 0 : index
    %102 = vector.load %arg1[%101, %c0_41, %c0_42] : memref<8x2x64xf32, #tpu.memory_space<vmem>>, vector<1x2x64xf32>
    %103 = vector.shape_cast %102 : vector<1x2x64xf32> to vector<2x64xf32>
    %c0_43 = arith.constant 0 : index
    %c0_44 = arith.constant 0 : index
    %104 = vector.load %arg8[%c0_43, %c0_44] : memref<2x16xf32, #tpu.memory_space<vmem>>, vector<2x16xf32>
    %c0_45 = arith.constant 0 : index
    %c0_46 = arith.constant 0 : index
    %105 = vector.load %arg5[%c0_45, %c0_46] : memref<16x64xf32, #tpu.memory_space<vmem>>, vector<16x64xf32>
    %cst_47 = arith.constant dense<0.000000e+00> : vector<2x64xf32>
    %106 = tpu.matmul %104, %105, %cst_47 {dimension_numbers = #tpu.dot_dimension_numbers<[1], [0], [0], [1], [0, 0, 1, 1], [], []>} : vector<2x16xf32>, vector<16x64xf32>, vector<2x64xf32> -> vector<2x64xf32>
    %107 = arith.addf %103, %106 : vector<2x64xf32>
    %c0_48 = arith.constant 0 : index
    %c0_49 = arith.constant 0 : index
    %108 = vector.load %arg9[%c0_48, %c0_49] : memref<2x16xf32, #tpu.memory_space<vmem>>, vector<2x16xf32>
    %109 = vector.extract_strided_slice %107 {offsets = [0, 0], sizes = [2, 16], strides = [1, 1]} : vector<2x64xf32> to vector<2x16xf32>
    %110 = arith.negf %109 : vector<2x16xf32>
    %111 = math.exp %110 : vector<2x16xf32>
    %cst_50 = arith.constant 1.000000e+00 : f32
    %112 = vector.broadcast %cst_50 : f32 to vector<2x16xf32>
    %113 = arith.addf %112, %111 : vector<2x16xf32>
    %114 = arith.divf %112, %113 : vector<2x16xf32>
    %115 = vector.extract_strided_slice %107 {offsets = [0, 16], sizes = [2, 16], strides = [1, 1]} : vector<2x64xf32> to vector<2x16xf32>
    %116 = arith.negf %115 : vector<2x16xf32>
    %117 = math.exp %116 : vector<2x16xf32>
    %cst_51 = arith.constant 1.000000e+00 : f32
    %118 = vector.broadcast %cst_51 : f32 to vector<2x16xf32>
    %119 = arith.addf %118, %117 : vector<2x16xf32>
    %120 = arith.divf %118, %119 : vector<2x16xf32>
    %121 = vector.extract_strided_slice %107 {offsets = [0, 32], sizes = [2, 16], strides = [1, 1]} : vector<2x64xf32> to vector<2x16xf32>
    %122 = math.tanh %121 : vector<2x16xf32>
    %123 = vector.extract_strided_slice %107 {offsets = [0, 48], sizes = [2, 16], strides = [1, 1]} : vector<2x64xf32> to vector<2x16xf32>
    %124 = arith.negf %123 : vector<2x16xf32>
    %125 = math.exp %124 : vector<2x16xf32>
    %cst_52 = arith.constant 1.000000e+00 : f32
    %126 = vector.broadcast %cst_52 : f32 to vector<2x16xf32>
    %127 = arith.addf %126, %125 : vector<2x16xf32>
    %128 = arith.divf %126, %127 : vector<2x16xf32>
    %129 = arith.mulf %120, %108 : vector<2x16xf32>
    %130 = arith.mulf %114, %122 : vector<2x16xf32>
    %131 = arith.addf %129, %130 : vector<2x16xf32>
    %132 = math.tanh %131 : vector<2x16xf32>
    %133 = arith.mulf %128, %132 : vector<2x16xf32>
    %134 = arith.index_cast %c1_i32_40 : i32 to index
    %c0_53 = arith.constant 0 : index
    %c0_54 = arith.constant 0 : index
    %135 = vector.load %arg3[%134, %c0_53, %c0_54] : memref<8x2x1xf32, #tpu.memory_space<vmem>>, vector<1x2x1xf32>
    %136 = vector.shape_cast %135 : vector<1x2x1xf32> to vector<2x1xf32>
    %137 = vector.broadcast %136 : vector<2x1xf32> to vector<2x16xf32>
    %138 = arith.mulf %137, %133 : vector<2x16xf32>
    %c0_55 = arith.constant 0 : index
    %c0_56 = arith.constant 0 : index
    %139 = vector.load %arg8[%c0_55, %c0_56] : memref<2x16xf32, #tpu.memory_space<vmem>>, vector<2x16xf32>
    tpu.vector_store %arg8[%c0_55, %c0_56], %138 {strides = array<i32>} : memref<2x16xf32, #tpu.memory_space<vmem>>, vector<2x16xf32>,
    %140 = vector.broadcast %136 : vector<2x1xf32> to vector<2x16xf32>
    %141 = arith.mulf %140, %131 : vector<2x16xf32>
    %c0_57 = arith.constant 0 : index
    %c0_58 = arith.constant 0 : index
    %142 = vector.load %arg9[%c0_57, %c0_58] : memref<2x16xf32, #tpu.memory_space<vmem>>, vector<2x16xf32>
    tpu.vector_store %arg9[%c0_57, %c0_58], %141 {strides = array<i32>} : memref<2x16xf32, #tpu.memory_space<vmem>>, vector<2x16xf32>,
    %c8_i32_59 = arith.constant 8 : i32
    %143 = arith.muli %arg0, %c8_i32_59 : i32
    %144 = arith.addi %143, %c1_i32_40 : i32
    %145 = arith.index_cast %144 : i32 to index
    %c0_60 = arith.constant 0 : index
    %c0_61 = arith.constant 0 : index
    %146 = vector.load %arg7[%145, %c0_60, %c0_61] : memref<16x2x32xf32, #tpu.memory_space<vmem>>, vector<1x2x16xf32>
    %147 = vector.shape_cast %146 : vector<1x2x16xf32> to vector<2x16xf32>
    %148 = vector.shape_cast %138 : vector<2x16xf32> to vector<1x2x16xf32>
    tpu.vector_store %arg7[%145, %c0_60, %c0_61], %148 {strides = array<i32>} : memref<16x2x32xf32, #tpu.memory_space<vmem>>, vector<1x2x16xf32>,
    %c7_i32_62 = arith.constant 7 : i32
    %149 = arith.subi %c7_i32_62, %c1_i32_40 : i32
    %150 = arith.index_cast %149 : i32 to index
    %c0_63 = arith.constant 0 : index
    %c0_64 = arith.constant 0 : index
    %151 = vector.load %arg2[%150, %c0_63, %c0_64] : memref<8x2x64xf32, #tpu.memory_space<vmem>>, vector<1x2x64xf32>
    %152 = vector.shape_cast %151 : vector<1x2x64xf32> to vector<2x64xf32>
    %c0_65 = arith.constant 0 : index
    %c0_66 = arith.constant 0 : index
    %153 = vector.load %arg10[%c0_65, %c0_66] : memref<2x16xf32, #tpu.memory_space<vmem>>, vector<2x16xf32>
    %c0_67 = arith.constant 0 : index
    %c0_68 = arith.constant 0 : index
    %154 = vector.load %arg6[%c0_67, %c0_68] : memref<16x64xf32, #tpu.memory_space<vmem>>, vector<16x64xf32>
    %cst_69 = arith.constant dense<0.000000e+00> : vector<2x64xf32>
    %155 = tpu.matmul %153, %154, %cst_69 {dimension_numbers = #tpu.dot_dimension_numbers<[1], [0], [0], [1], [0, 0, 1, 1], [], []>} : vector<2x16xf32>, vector<16x64xf32>, vector<2x64xf32> -> vector<2x64xf32>
    %156 = arith.addf %152, %155 : vector<2x64xf32>
    %c0_70 = arith.constant 0 : index
    %c0_71 = arith.constant 0 : index
    %157 = vector.load %arg11[%c0_70, %c0_71] : memref<2x16xf32, #tpu.memory_space<vmem>>, vector<2x16xf32>
    %158 = vector.extract_strided_slice %156 {offsets = [0, 0], sizes = [2, 16], strides = [1, 1]} : vector<2x64xf32> to vector<2x16xf32>
    %159 = arith.negf %158 : vector<2x16xf32>
    %160 = math.exp %159 : vector<2x16xf32>
    %cst_72 = arith.constant 1.000000e+00 : f32
    %161 = vector.broadcast %cst_72 : f32 to vector<2x16xf32>
    %162 = arith.addf %161, %160 : vector<2x16xf32>
    %163 = arith.divf %161, %162 : vector<2x16xf32>
    %164 = vector.extract_strided_slice %156 {offsets = [0, 16], sizes = [2, 16], strides = [1, 1]} : vector<2x64xf32> to vector<2x16xf32>
    %165 = arith.negf %164 : vector<2x16xf32>
    %166 = math.exp %165 : vector<2x16xf32>
    %cst_73 = arith.constant 1.000000e+00 : f32
    %167 = vector.broadcast %cst_73 : f32 to vector<2x16xf32>
    %168 = arith.addf %167, %166 : vector<2x16xf32>
    %169 = arith.divf %167, %168 : vector<2x16xf32>
    %170 = vector.extract_strided_slice %156 {offsets = [0, 32], sizes = [2, 16], strides = [1, 1]} : vector<2x64xf32> to vector<2x16xf32>
    %171 = math.tanh %170 : vector<2x16xf32>
    %172 = vector.extract_strided_slice %156 {offsets = [0, 48], sizes = [2, 16], strides = [1, 1]} : vector<2x64xf32> to vector<2x16xf32>
    %173 = arith.negf %172 : vector<2x16xf32>
    %174 = math.exp %173 : vector<2x16xf32>
    %cst_74 = arith.constant 1.000000e+00 : f32
    %175 = vector.broadcast %cst_74 : f32 to vector<2x16xf32>
    %176 = arith.addf %175, %174 : vector<2x16xf32>
    %177 = arith.divf %175, %176 : vector<2x16xf32>
    %178 = arith.mulf %169, %157 : vector<2x16xf32>
    %179 = arith.mulf %163, %171 : vector<2x16xf32>
    %180 = arith.addf %178, %179 : vector<2x16xf32>
    %181 = math.tanh %180 : vector<2x16xf32>
    %182 = arith.mulf %177, %181 : vector<2x16xf32>
    %183 = arith.index_cast %149 : i32 to index
    %c0_75 = arith.constant 0 : index
    %c0_76 = arith.constant 0 : index
    %184 = vector.load %arg4[%183, %c0_75, %c0_76] : memref<8x2x1xf32, #tpu.memory_space<vmem>>, vector<1x2x1xf32>
    %185 = vector.shape_cast %184 : vector<1x2x1xf32> to vector<2x1xf32>
    %186 = vector.broadcast %185 : vector<2x1xf32> to vector<2x16xf32>
    %187 = arith.mulf %186, %182 : vector<2x16xf32>
    %c0_77 = arith.constant 0 : index
    %c0_78 = arith.constant 0 : index
    %188 = vector.load %arg10[%c0_77, %c0_78] : memref<2x16xf32, #tpu.memory_space<vmem>>, vector<2x16xf32>
    tpu.vector_store %arg10[%c0_77, %c0_78], %187 {strides = array<i32>} : memref<2x16xf32, #tpu.memory_space<vmem>>, vector<2x16xf32>,
    %189 = vector.broadcast %185 : vector<2x1xf32> to vector<2x16xf32>
    %190 = arith.mulf %189, %180 : vector<2x16xf32>
    %c0_79 = arith.constant 0 : index
    %c0_80 = arith.constant 0 : index
    %191 = vector.load %arg11[%c0_79, %c0_80] : memref<2x16xf32, #tpu.memory_space<vmem>>, vector<2x16xf32>
    tpu.vector_store %arg11[%c0_79, %c0_80], %190 {strides = array<i32>} : memref<2x16xf32, #tpu.memory_space<vmem>>, vector<2x16xf32>,
    %c1_i32_81 = arith.constant 1 : i32
    %192 = arith.subi %c1_i32_81, %arg0 : i32
    %c8_i32_82 = arith.constant 8 : i32
    %193 = arith.muli %192, %c8_i32_82 : i32
    %194 = arith.addi %193, %149 : i32
    %195 = arith.index_cast %194 : i32 to index
    %c0_83 = arith.constant 0 : index
    %c16_84 = arith.constant 16 : index
    %196 = vector.load %arg7[%195, %c0_83, %c16_84] : memref<16x2x32xf32, #tpu.memory_space<vmem>>, vector<1x2x16xf32>
    %197 = vector.shape_cast %196 : vector<1x2x16xf32> to vector<2x16xf32>
    %198 = vector.shape_cast %187 : vector<2x16xf32> to vector<1x2x16xf32>
    tpu.vector_store %arg7[%195, %c0_83, %c16_84], %198 {strides = array<i32>} : memref<16x2x32xf32, #tpu.memory_space<vmem>>, vector<1x2x16xf32>,
    %c2_i32 = arith.constant 2 : i32
    %199 = arith.index_cast %c2_i32 : i32 to index
    %c0_85 = arith.constant 0 : index
    %c0_86 = arith.constant 0 : index
    %200 = vector.load %arg1[%199, %c0_85, %c0_86] : memref<8x2x64xf32, #tpu.memory_space<vmem>>, vector<1x2x64xf32>
    %201 = vector.shape_cast %200 : vector<1x2x64xf32> to vector<2x64xf32>
    %c0_87 = arith.constant 0 : index
    %c0_88 = arith.constant 0 : index
    %202 = vector.load %arg8[%c0_87, %c0_88] : memref<2x16xf32, #tpu.memory_space<vmem>>, vector<2x16xf32>
    %c0_89 = arith.constant 0 : index
    %c0_90 = arith.constant 0 : index
    %203 = vector.load %arg5[%c0_89, %c0_90] : memref<16x64xf32, #tpu.memory_space<vmem>>, vector<16x64xf32>
    %cst_91 = arith.constant dense<0.000000e+00> : vector<2x64xf32>
    %204 = tpu.matmul %202, %203, %cst_91 {dimension_numbers = #tpu.dot_dimension_numbers<[1], [0], [0], [1], [0, 0, 1, 1], [], []>} : vector<2x16xf32>, vector<16x64xf32>, vector<2x64xf32> -> vector<2x64xf32>
    %205 = arith.addf %201, %204 : vector<2x64xf32>
    %c0_92 = arith.constant 0 : index
    %c0_93 = arith.constant 0 : index
    %206 = vector.load %arg9[%c0_92, %c0_93] : memref<2x16xf32, #tpu.memory_space<vmem>>, vector<2x16xf32>
    %207 = vector.extract_strided_slice %205 {offsets = [0, 0], sizes = [2, 16], strides = [1, 1]} : vector<2x64xf32> to vector<2x16xf32>
    %208 = arith.negf %207 : vector<2x16xf32>
    %209 = math.exp %208 : vector<2x16xf32>
    %cst_94 = arith.constant 1.000000e+00 : f32
    %210 = vector.broadcast %cst_94 : f32 to vector<2x16xf32>
    %211 = arith.addf %210, %209 : vector<2x16xf32>
    %212 = arith.divf %210, %211 : vector<2x16xf32>
    %213 = vector.extract_strided_slice %205 {offsets = [0, 16], sizes = [2, 16], strides = [1, 1]} : vector<2x64xf32> to vector<2x16xf32>
    %214 = arith.negf %213 : vector<2x16xf32>
    %215 = math.exp %214 : vector<2x16xf32>
    %cst_95 = arith.constant 1.000000e+00 : f32
    %216 = vector.broadcast %cst_95 : f32 to vector<2x16xf32>
    %217 = arith.addf %216, %215 : vector<2x16xf32>
    %218 = arith.divf %216, %217 : vector<2x16xf32>
    %219 = vector.extract_strided_slice %205 {offsets = [0, 32], sizes = [2, 16], strides = [1, 1]} : vector<2x64xf32> to vector<2x16xf32>
    %220 = math.tanh %219 : vector<2x16xf32>
    %221 = vector.extract_strided_slice %205 {offsets = [0, 48], sizes = [2, 16], strides = [1, 1]} : vector<2x64xf32> to vector<2x16xf32>
    %222 = arith.negf %221 : vector<2x16xf32>
    %223 = math.exp %222 : vector<2x16xf32>
    %cst_96 = arith.constant 1.000000e+00 : f32
    %224 = vector.broadcast %cst_96 : f32 to vector<2x16xf32>
    %225 = arith.addf %224, %223 : vector<2x16xf32>
    %226 = arith.divf %224, %225 : vector<2x16xf32>
    %227 = arith.mulf %218, %206 : vector<2x16xf32>
    %228 = arith.mulf %212, %220 : vector<2x16xf32>
    %229 = arith.addf %227, %228 : vector<2x16xf32>
    %230 = math.tanh %229 : vector<2x16xf32>
    %231 = arith.mulf %226, %230 : vector<2x16xf32>
    %232 = arith.index_cast %c2_i32 : i32 to index
    %c0_97 = arith.constant 0 : index
    %c0_98 = arith.constant 0 : index
    %233 = vector.load %arg3[%232, %c0_97, %c0_98] : memref<8x2x1xf32, #tpu.memory_space<vmem>>, vector<1x2x1xf32>
    %234 = vector.shape_cast %233 : vector<1x2x1xf32> to vector<2x1xf32>
    %235 = vector.broadcast %234 : vector<2x1xf32> to vector<2x16xf32>
    %236 = arith.mulf %235, %231 : vector<2x16xf32>
    %c0_99 = arith.constant 0 : index
    %c0_100 = arith.constant 0 : index
    %237 = vector.load %arg8[%c0_99, %c0_100] : memref<2x16xf32, #tpu.memory_space<vmem>>, vector<2x16xf32>
    tpu.vector_store %arg8[%c0_99, %c0_100], %236 {strides = array<i32>} : memref<2x16xf32, #tpu.memory_space<vmem>>, vector<2x16xf32>,
    %238 = vector.broadcast %234 : vector<2x1xf32> to vector<2x16xf32>
    %239 = arith.mulf %238, %229 : vector<2x16xf32>
    %c0_101 = arith.constant 0 : index
    %c0_102 = arith.constant 0 : index
    %240 = vector.load %arg9[%c0_101, %c0_102] : memref<2x16xf32, #tpu.memory_space<vmem>>, vector<2x16xf32>
    tpu.vector_store %arg9[%c0_101, %c0_102], %239 {strides = array<i32>} : memref<2x16xf32, #tpu.memory_space<vmem>>, vector<2x16xf32>,
    %c8_i32_103 = arith.constant 8 : i32
    %241 = arith.muli %arg0, %c8_i32_103 : i32
    %242 = arith.addi %241, %c2_i32 : i32
    %243 = arith.index_cast %242 : i32 to index
    %c0_104 = arith.constant 0 : index
    %c0_105 = arith.constant 0 : index
    %244 = vector.load %arg7[%243, %c0_104, %c0_105] : memref<16x2x32xf32, #tpu.memory_space<vmem>>, vector<1x2x16xf32>
    %245 = vector.shape_cast %244 : vector<1x2x16xf32> to vector<2x16xf32>
    %246 = vector.shape_cast %236 : vector<2x16xf32> to vector<1x2x16xf32>
    tpu.vector_store %arg7[%243, %c0_104, %c0_105], %246 {strides = array<i32>} : memref<16x2x32xf32, #tpu.memory_space<vmem>>, vector<1x2x16xf32>,
    %c7_i32_106 = arith.constant 7 : i32
    %247 = arith.subi %c7_i32_106, %c2_i32 : i32
    %248 = arith.index_cast %247 : i32 to index
    %c0_107 = arith.constant 0 : index
    %c0_108 = arith.constant 0 : index
    %249 = vector.load %arg2[%248, %c0_107, %c0_108] : memref<8x2x64xf32, #tpu.memory_space<vmem>>, vector<1x2x64xf32>
    %250 = vector.shape_cast %249 : vector<1x2x64xf32> to vector<2x64xf32>
    %c0_109 = arith.constant 0 : index
    %c0_110 = arith.constant 0 : index
    %251 = vector.load %arg10[%c0_109, %c0_110] : memref<2x16xf32, #tpu.memory_space<vmem>>, vector<2x16xf32>
    %c0_111 = arith.constant 0 : index
    %c0_112 = arith.constant 0 : index
    %252 = vector.load %arg6[%c0_111, %c0_112] : memref<16x64xf32, #tpu.memory_space<vmem>>, vector<16x64xf32>
    %cst_113 = arith.constant dense<0.000000e+00> : vector<2x64xf32>
    %253 = tpu.matmul %251, %252, %cst_113 {dimension_numbers = #tpu.dot_dimension_numbers<[1], [0], [0], [1], [0, 0, 1, 1], [], []>} : vector<2x16xf32>, vector<16x64xf32>, vector<2x64xf32> -> vector<2x64xf32>
    %254 = arith.addf %250, %253 : vector<2x64xf32>
    %c0_114 = arith.constant 0 : index
    %c0_115 = arith.constant 0 : index
    %255 = vector.load %arg11[%c0_114, %c0_115] : memref<2x16xf32, #tpu.memory_space<vmem>>, vector<2x16xf32>
    %256 = vector.extract_strided_slice %254 {offsets = [0, 0], sizes = [2, 16], strides = [1, 1]} : vector<2x64xf32> to vector<2x16xf32>
    %257 = arith.negf %256 : vector<2x16xf32>
    %258 = math.exp %257 : vector<2x16xf32>
    %cst_116 = arith.constant 1.000000e+00 : f32
    %259 = vector.broadcast %cst_116 : f32 to vector<2x16xf32>
    %260 = arith.addf %259, %258 : vector<2x16xf32>
    %261 = arith.divf %259, %260 : vector<2x16xf32>
    %262 = vector.extract_strided_slice %254 {offsets = [0, 16], sizes = [2, 16], strides = [1, 1]} : vector<2x64xf32> to vector<2x16xf32>
    %263 = arith.negf %262 : vector<2x16xf32>
    %264 = math.exp %263 : vector<2x16xf32>
    %cst_117 = arith.constant 1.000000e+00 : f32
    %265 = vector.broadcast %cst_117 : f32 to vector<2x16xf32>
    %266 = arith.addf %265, %264 : vector<2x16xf32>
    %267 = arith.divf %265, %266 : vector<2x16xf32>
    %268 = vector.extract_strided_slice %254 {offsets = [0, 32], sizes = [2, 16], strides = [1, 1]} : vector<2x64xf32> to vector<2x16xf32>
    %269 = math.tanh %268 : vector<2x16xf32>
    %270 = vector.extract_strided_slice %254 {offsets = [0, 48], sizes = [2, 16], strides = [1, 1]} : vector<2x64xf32> to vector<2x16xf32>
    %271 = arith.negf %270 : vector<2x16xf32>
    %272 = math.exp %271 : vector<2x16xf32>
    %cst_118 = arith.constant 1.000000e+00 : f32
    %273 = vector.broadcast %cst_118 : f32 to vector<2x16xf32>
    %274 = arith.addf %273, %272 : vector<2x16xf32>
    %275 = arith.divf %273, %274 : vector<2x16xf32>
    %276 = arith.mulf %267, %255 : vector<2x16xf32>
    %277 = arith.mulf %261, %269 : vector<2x16xf32>
    %278 = arith.addf %276, %277 : vector<2x16xf32>
    %279 = math.tanh %278 : vector<2x16xf32>
    %280 = arith.mulf %275, %279 : vector<2x16xf32>
    %281 = arith.index_cast %247 : i32 to index
    %c0_119 = arith.constant 0 : index
    %c0_120 = arith.constant 0 : index
    %282 = vector.load %arg4[%281, %c0_119, %c0_120] : memref<8x2x1xf32, #tpu.memory_space<vmem>>, vector<1x2x1xf32>
    %283 = vector.shape_cast %282 : vector<1x2x1xf32> to vector<2x1xf32>
    %284 = vector.broadcast %283 : vector<2x1xf32> to vector<2x16xf32>
    %285 = arith.mulf %284, %280 : vector<2x16xf32>
    %c0_121 = arith.constant 0 : index
    %c0_122 = arith.constant 0 : index
    %286 = vector.load %arg10[%c0_121, %c0_122] : memref<2x16xf32, #tpu.memory_space<vmem>>, vector<2x16xf32>
    tpu.vector_store %arg10[%c0_121, %c0_122], %285 {strides = array<i32>} : memref<2x16xf32, #tpu.memory_space<vmem>>, vector<2x16xf32>,
    %287 = vector.broadcast %283 : vector<2x1xf32> to vector<2x16xf32>
    %288 = arith.mulf %287, %278 : vector<2x16xf32>
    %c0_123 = arith.constant 0 : index
    %c0_124 = arith.constant 0 : index
    %289 = vector.load %arg11[%c0_123, %c0_124] : memref<2x16xf32, #tpu.memory_space<vmem>>, vector<2x16xf32>
    tpu.vector_store %arg11[%c0_123, %c0_124], %288 {strides = array<i32>} : memref<2x16xf32, #tpu.memory_space<vmem>>, vector<2x16xf32>,
    %c1_i32_125 = arith.constant 1 : i32
    %290 = arith.subi %c1_i32_125, %arg0 : i32
    %c8_i32_126 = arith.constant 8 : i32
    %291 = arith.muli %290, %c8_i32_126 : i32
    %292 = arith.addi %291, %247 : i32
    %293 = arith.index_cast %292 : i32 to index
    %c0_127 = arith.constant 0 : index
    %c16_128 = arith.constant 16 : index
    %294 = vector.load %arg7[%293, %c0_127, %c16_128] : memref<16x2x32xf32, #tpu.memory_space<vmem>>, vector<1x2x16xf32>
    %295 = vector.shape_cast %294 : vector<1x2x16xf32> to vector<2x16xf32>
    %296 = vector.shape_cast %285 : vector<2x16xf32> to vector<1x2x16xf32>
    tpu.vector_store %arg7[%293, %c0_127, %c16_128], %296 {strides = array<i32>} : memref<16x2x32xf32, #tpu.memory_space<vmem>>, vector<1x2x16xf32>,
    %c3_i32 = arith.constant 3 : i32
    %297 = arith.index_cast %c3_i32 : i32 to index
    %c0_129 = arith.constant 0 : index
    %c0_130 = arith.constant 0 : index
    %298 = vector.load %arg1[%297, %c0_129, %c0_130] : memref<8x2x64xf32, #tpu.memory_space<vmem>>, vector<1x2x64xf32>
    %299 = vector.shape_cast %298 : vector<1x2x64xf32> to vector<2x64xf32>
    %c0_131 = arith.constant 0 : index
    %c0_132 = arith.constant 0 : index
    %300 = vector.load %arg8[%c0_131, %c0_132] : memref<2x16xf32, #tpu.memory_space<vmem>>, vector<2x16xf32>
    %c0_133 = arith.constant 0 : index
    %c0_134 = arith.constant 0 : index
    %301 = vector.load %arg5[%c0_133, %c0_134] : memref<16x64xf32, #tpu.memory_space<vmem>>, vector<16x64xf32>
    %cst_135 = arith.constant dense<0.000000e+00> : vector<2x64xf32>
    %302 = tpu.matmul %300, %301, %cst_135 {dimension_numbers = #tpu.dot_dimension_numbers<[1], [0], [0], [1], [0, 0, 1, 1], [], []>} : vector<2x16xf32>, vector<16x64xf32>, vector<2x64xf32> -> vector<2x64xf32>
    %303 = arith.addf %299, %302 : vector<2x64xf32>
    %c0_136 = arith.constant 0 : index
    %c0_137 = arith.constant 0 : index
    %304 = vector.load %arg9[%c0_136, %c0_137] : memref<2x16xf32, #tpu.memory_space<vmem>>, vector<2x16xf32>
    %305 = vector.extract_strided_slice %303 {offsets = [0, 0], sizes = [2, 16], strides = [1, 1]} : vector<2x64xf32> to vector<2x16xf32>
    %306 = arith.negf %305 : vector<2x16xf32>
    %307 = math.exp %306 : vector<2x16xf32>
    %cst_138 = arith.constant 1.000000e+00 : f32
    %308 = vector.broadcast %cst_138 : f32 to vector<2x16xf32>
    %309 = arith.addf %308, %307 : vector<2x16xf32>
    %310 = arith.divf %308, %309 : vector<2x16xf32>
    %311 = vector.extract_strided_slice %303 {offsets = [0, 16], sizes = [2, 16], strides = [1, 1]} : vector<2x64xf32> to vector<2x16xf32>
    %312 = arith.negf %311 : vector<2x16xf32>
    %313 = math.exp %312 : vector<2x16xf32>
    %cst_139 = arith.constant 1.000000e+00 : f32
    %314 = vector.broadcast %cst_139 : f32 to vector<2x16xf32>
    %315 = arith.addf %314, %313 : vector<2x16xf32>
    %316 = arith.divf %314, %315 : vector<2x16xf32>
    %317 = vector.extract_strided_slice %303 {offsets = [0, 32], sizes = [2, 16], strides = [1, 1]} : vector<2x64xf32> to vector<2x16xf32>
    %318 = math.tanh %317 : vector<2x16xf32>
    %319 = vector.extract_strided_slice %303 {offsets = [0, 48], sizes = [2, 16], strides = [1, 1]} : vector<2x64xf32> to vector<2x16xf32>
    %320 = arith.negf %319 : vector<2x16xf32>
    %321 = math.exp %320 : vector<2x16xf32>
    %cst_140 = arith.constant 1.000000e+00 : f32
    %322 = vector.broadcast %cst_140 : f32 to vector<2x16xf32>
    %323 = arith.addf %322, %321 : vector<2x16xf32>
    %324 = arith.divf %322, %323 : vector<2x16xf32>
    %325 = arith.mulf %316, %304 : vector<2x16xf32>
    %326 = arith.mulf %310, %318 : vector<2x16xf32>
    %327 = arith.addf %325, %326 : vector<2x16xf32>
    %328 = math.tanh %327 : vector<2x16xf32>
    %329 = arith.mulf %324, %328 : vector<2x16xf32>
    %330 = arith.index_cast %c3_i32 : i32 to index
    %c0_141 = arith.constant 0 : index
    %c0_142 = arith.constant 0 : index
    %331 = vector.load %arg3[%330, %c0_141, %c0_142] : memref<8x2x1xf32, #tpu.memory_space<vmem>>, vector<1x2x1xf32>
    %332 = vector.shape_cast %331 : vector<1x2x1xf32> to vector<2x1xf32>
    %333 = vector.broadcast %332 : vector<2x1xf32> to vector<2x16xf32>
    %334 = arith.mulf %333, %329 : vector<2x16xf32>
    %c0_143 = arith.constant 0 : index
    %c0_144 = arith.constant 0 : index
    %335 = vector.load %arg8[%c0_143, %c0_144] : memref<2x16xf32, #tpu.memory_space<vmem>>, vector<2x16xf32>
    tpu.vector_store %arg8[%c0_143, %c0_144], %334 {strides = array<i32>} : memref<2x16xf32, #tpu.memory_space<vmem>>, vector<2x16xf32>,
    %336 = vector.broadcast %332 : vector<2x1xf32> to vector<2x16xf32>
    %337 = arith.mulf %336, %327 : vector<2x16xf32>
    %c0_145 = arith.constant 0 : index
    %c0_146 = arith.constant 0 : index
    %338 = vector.load %arg9[%c0_145, %c0_146] : memref<2x16xf32, #tpu.memory_space<vmem>>, vector<2x16xf32>
    tpu.vector_store %arg9[%c0_145, %c0_146], %337 {strides = array<i32>} : memref<2x16xf32, #tpu.memory_space<vmem>>, vector<2x16xf32>,
    %c8_i32_147 = arith.constant 8 : i32
    %339 = arith.muli %arg0, %c8_i32_147 : i32
    %340 = arith.addi %339, %c3_i32 : i32
    %341 = arith.index_cast %340 : i32 to index
    %c0_148 = arith.constant 0 : index
    %c0_149 = arith.constant 0 : index
    %342 = vector.load %arg7[%341, %c0_148, %c0_149] : memref<16x2x32xf32, #tpu.memory_space<vmem>>, vector<1x2x16xf32>
    %343 = vector.shape_cast %342 : vector<1x2x16xf32> to vector<2x16xf32>
    %344 = vector.shape_cast %334 : vector<2x16xf32> to vector<1x2x16xf32>
    tpu.vector_store %arg7[%341, %c0_148, %c0_149], %344 {strides = array<i32>} : memref<16x2x32xf32, #tpu.memory_space<vmem>>, vector<1x2x16xf32>,
    %c7_i32_150 = arith.constant 7 : i32
    %345 = arith.subi %c7_i32_150, %c3_i32 : i32
    %346 = arith.index_cast %345 : i32 to index
    %c0_151 = arith.constant 0 : index
    %c0_152 = arith.constant 0 : index
    %347 = vector.load %arg2[%346, %c0_151, %c0_152] : memref<8x2x64xf32, #tpu.memory_space<vmem>>, vector<1x2x64xf32>
    %348 = vector.shape_cast %347 : vector<1x2x64xf32> to vector<2x64xf32>
    %c0_153 = arith.constant 0 : index
    %c0_154 = arith.constant 0 : index
    %349 = vector.load %arg10[%c0_153, %c0_154] : memref<2x16xf32, #tpu.memory_space<vmem>>, vector<2x16xf32>
    %c0_155 = arith.constant 0 : index
    %c0_156 = arith.constant 0 : index
    %350 = vector.load %arg6[%c0_155, %c0_156] : memref<16x64xf32, #tpu.memory_space<vmem>>, vector<16x64xf32>
    %cst_157 = arith.constant dense<0.000000e+00> : vector<2x64xf32>
    %351 = tpu.matmul %349, %350, %cst_157 {dimension_numbers = #tpu.dot_dimension_numbers<[1], [0], [0], [1], [0, 0, 1, 1], [], []>} : vector<2x16xf32>, vector<16x64xf32>, vector<2x64xf32> -> vector<2x64xf32>
    %352 = arith.addf %348, %351 : vector<2x64xf32>
    %c0_158 = arith.constant 0 : index
    %c0_159 = arith.constant 0 : index
    %353 = vector.load %arg11[%c0_158, %c0_159] : memref<2x16xf32, #tpu.memory_space<vmem>>, vector<2x16xf32>
    %354 = vector.extract_strided_slice %352 {offsets = [0, 0], sizes = [2, 16], strides = [1, 1]} : vector<2x64xf32> to vector<2x16xf32>
    %355 = arith.negf %354 : vector<2x16xf32>
    %356 = math.exp %355 : vector<2x16xf32>
    %cst_160 = arith.constant 1.000000e+00 : f32
    %357 = vector.broadcast %cst_160 : f32 to vector<2x16xf32>
    %358 = arith.addf %357, %356 : vector<2x16xf32>
    %359 = arith.divf %357, %358 : vector<2x16xf32>
    %360 = vector.extract_strided_slice %352 {offsets = [0, 16], sizes = [2, 16], strides = [1, 1]} : vector<2x64xf32> to vector<2x16xf32>
    %361 = arith.negf %360 : vector<2x16xf32>
    %362 = math.exp %361 : vector<2x16xf32>
    %cst_161 = arith.constant 1.000000e+00 : f32
    %363 = vector.broadcast %cst_161 : f32 to vector<2x16xf32>
    %364 = arith.addf %363, %362 : vector<2x16xf32>
    %365 = arith.divf %363, %364 : vector<2x16xf32>
    %366 = vector.extract_strided_slice %352 {offsets = [0, 32], sizes = [2, 16], strides = [1, 1]} : vector<2x64xf32> to vector<2x16xf32>
    %367 = math.tanh %366 : vector<2x16xf32>
    %368 = vector.extract_strided_slice %352 {offsets = [0, 48], sizes = [2, 16], strides = [1, 1]} : vector<2x64xf32> to vector<2x16xf32>
    %369 = arith.negf %368 : vector<2x16xf32>
    %370 = math.exp %369 : vector<2x16xf32>
    %cst_162 = arith.constant 1.000000e+00 : f32
    %371 = vector.broadcast %cst_162 : f32 to vector<2x16xf32>
    %372 = arith.addf %371, %370 : vector<2x16xf32>
    %373 = arith.divf %371, %372 : vector<2x16xf32>
    %374 = arith.mulf %365, %353 : vector<2x16xf32>
    %375 = arith.mulf %359, %367 : vector<2x16xf32>
    %376 = arith.addf %374, %375 : vector<2x16xf32>
    %377 = math.tanh %376 : vector<2x16xf32>
    %378 = arith.mulf %373, %377 : vector<2x16xf32>
    %379 = arith.index_cast %345 : i32 to index
    %c0_163 = arith.constant 0 : index
    %c0_164 = arith.constant 0 : index
    %380 = vector.load %arg4[%379, %c0_163, %c0_164] : memref<8x2x1xf32, #tpu.memory_space<vmem>>, vector<1x2x1xf32>
    %381 = vector.shape_cast %380 : vector<1x2x1xf32> to vector<2x1xf32>
    %382 = vector.broadcast %381 : vector<2x1xf32> to vector<2x16xf32>
    %383 = arith.mulf %382, %378 : vector<2x16xf32>
    %c0_165 = arith.constant 0 : index
    %c0_166 = arith.constant 0 : index
    %384 = vector.load %arg10[%c0_165, %c0_166] : memref<2x16xf32, #tpu.memory_space<vmem>>, vector<2x16xf32>
    tpu.vector_store %arg10[%c0_165, %c0_166], %383 {strides = array<i32>} : memref<2x16xf32, #tpu.memory_space<vmem>>, vector<2x16xf32>,
    %385 = vector.broadcast %381 : vector<2x1xf32> to vector<2x16xf32>
    %386 = arith.mulf %385, %376 : vector<2x16xf32>
    %c0_167 = arith.constant 0 : index
    %c0_168 = arith.constant 0 : index
    %387 = vector.load %arg11[%c0_167, %c0_168] : memref<2x16xf32, #tpu.memory_space<vmem>>, vector<2x16xf32>
    tpu.vector_store %arg11[%c0_167, %c0_168], %386 {strides = array<i32>} : memref<2x16xf32, #tpu.memory_space<vmem>>, vector<2x16xf32>,
    %c1_i32_169 = arith.constant 1 : i32
    %388 = arith.subi %c1_i32_169, %arg0 : i32
    %c8_i32_170 = arith.constant 8 : i32
    %389 = arith.muli %388, %c8_i32_170 : i32
    %390 = arith.addi %389, %345 : i32
    %391 = arith.index_cast %390 : i32 to index
    %c0_171 = arith.constant 0 : index
    %c16_172 = arith.constant 16 : index
    %392 = vector.load %arg7[%391, %c0_171, %c16_172] : memref<16x2x32xf32, #tpu.memory_space<vmem>>, vector<1x2x16xf32>
    %393 = vector.shape_cast %392 : vector<1x2x16xf32> to vector<2x16xf32>
    %394 = vector.shape_cast %383 : vector<2x16xf32> to vector<1x2x16xf32>
    tpu.vector_store %arg7[%391, %c0_171, %c16_172], %394 {strides = array<i32>} : memref<16x2x32xf32, #tpu.memory_space<vmem>>, vector<1x2x16xf32>,
    %c4_i32 = arith.constant 4 : i32
    %395 = arith.index_cast %c4_i32 : i32 to index
    %c0_173 = arith.constant 0 : index
    %c0_174 = arith.constant 0 : index
    %396 = vector.load %arg1[%395, %c0_173, %c0_174] : memref<8x2x64xf32, #tpu.memory_space<vmem>>, vector<1x2x64xf32>
    %397 = vector.shape_cast %396 : vector<1x2x64xf32> to vector<2x64xf32>
    %c0_175 = arith.constant 0 : index
    %c0_176 = arith.constant 0 : index
    %398 = vector.load %arg8[%c0_175, %c0_176] : memref<2x16xf32, #tpu.memory_space<vmem>>, vector<2x16xf32>
    %c0_177 = arith.constant 0 : index
    %c0_178 = arith.constant 0 : index
    %399 = vector.load %arg5[%c0_177, %c0_178] : memref<16x64xf32, #tpu.memory_space<vmem>>, vector<16x64xf32>
    %cst_179 = arith.constant dense<0.000000e+00> : vector<2x64xf32>
    %400 = tpu.matmul %398, %399, %cst_179 {dimension_numbers = #tpu.dot_dimension_numbers<[1], [0], [0], [1], [0, 0, 1, 1], [], []>} : vector<2x16xf32>, vector<16x64xf32>, vector<2x64xf32> -> vector<2x64xf32>
    %401 = arith.addf %397, %400 : vector<2x64xf32>
    %c0_180 = arith.constant 0 : index
    %c0_181 = arith.constant 0 : index
    %402 = vector.load %arg9[%c0_180, %c0_181] : memref<2x16xf32, #tpu.memory_space<vmem>>, vector<2x16xf32>
    %403 = vector.extract_strided_slice %401 {offsets = [0, 0], sizes = [2, 16], strides = [1, 1]} : vector<2x64xf32> to vector<2x16xf32>
    %404 = arith.negf %403 : vector<2x16xf32>
    %405 = math.exp %404 : vector<2x16xf32>
    %cst_182 = arith.constant 1.000000e+00 : f32
    %406 = vector.broadcast %cst_182 : f32 to vector<2x16xf32>
    %407 = arith.addf %406, %405 : vector<2x16xf32>
    %408 = arith.divf %406, %407 : vector<2x16xf32>
    %409 = vector.extract_strided_slice %401 {offsets = [0, 16], sizes = [2, 16], strides = [1, 1]} : vector<2x64xf32> to vector<2x16xf32>
    %410 = arith.negf %409 : vector<2x16xf32>
    %411 = math.exp %410 : vector<2x16xf32>
    %cst_183 = arith.constant 1.000000e+00 : f32
    %412 = vector.broadcast %cst_183 : f32 to vector<2x16xf32>
    %413 = arith.addf %412, %411 : vector<2x16xf32>
    %414 = arith.divf %412, %413 : vector<2x16xf32>
    %415 = vector.extract_strided_slice %401 {offsets = [0, 32], sizes = [2, 16], strides = [1, 1]} : vector<2x64xf32> to vector<2x16xf32>
    %416 = math.tanh %415 : vector<2x16xf32>
    %417 = vector.extract_strided_slice %401 {offsets = [0, 48], sizes = [2, 16], strides = [1, 1]} : vector<2x64xf32> to vector<2x16xf32>
    %418 = arith.negf %417 : vector<2x16xf32>
    %419 = math.exp %418 : vector<2x16xf32>
    %cst_184 = arith.constant 1.000000e+00 : f32
    %420 = vector.broadcast %cst_184 : f32 to vector<2x16xf32>
    %421 = arith.addf %420, %419 : vector<2x16xf32>
    %422 = arith.divf %420, %421 : vector<2x16xf32>
    %423 = arith.mulf %414, %402 : vector<2x16xf32>
    %424 = arith.mulf %408, %416 : vector<2x16xf32>
    %425 = arith.addf %423, %424 : vector<2x16xf32>
    %426 = math.tanh %425 : vector<2x16xf32>
    %427 = arith.mulf %422, %426 : vector<2x16xf32>
    %428 = arith.index_cast %c4_i32 : i32 to index
    %c0_185 = arith.constant 0 : index
    %c0_186 = arith.constant 0 : index
    %429 = vector.load %arg3[%428, %c0_185, %c0_186] : memref<8x2x1xf32, #tpu.memory_space<vmem>>, vector<1x2x1xf32>
    %430 = vector.shape_cast %429 : vector<1x2x1xf32> to vector<2x1xf32>
    %431 = vector.broadcast %430 : vector<2x1xf32> to vector<2x16xf32>
    %432 = arith.mulf %431, %427 : vector<2x16xf32>
    %c0_187 = arith.constant 0 : index
    %c0_188 = arith.constant 0 : index
    %433 = vector.load %arg8[%c0_187, %c0_188] : memref<2x16xf32, #tpu.memory_space<vmem>>, vector<2x16xf32>
    tpu.vector_store %arg8[%c0_187, %c0_188], %432 {strides = array<i32>} : memref<2x16xf32, #tpu.memory_space<vmem>>, vector<2x16xf32>,
    %434 = vector.broadcast %430 : vector<2x1xf32> to vector<2x16xf32>
    %435 = arith.mulf %434, %425 : vector<2x16xf32>
    %c0_189 = arith.constant 0 : index
    %c0_190 = arith.constant 0 : index
    %436 = vector.load %arg9[%c0_189, %c0_190] : memref<2x16xf32, #tpu.memory_space<vmem>>, vector<2x16xf32>
    tpu.vector_store %arg9[%c0_189, %c0_190], %435 {strides = array<i32>} : memref<2x16xf32, #tpu.memory_space<vmem>>, vector<2x16xf32>,
    %c8_i32_191 = arith.constant 8 : i32
    %437 = arith.muli %arg0, %c8_i32_191 : i32
    %438 = arith.addi %437, %c4_i32 : i32
    %439 = arith.index_cast %438 : i32 to index
    %c0_192 = arith.constant 0 : index
    %c0_193 = arith.constant 0 : index
    %440 = vector.load %arg7[%439, %c0_192, %c0_193] : memref<16x2x32xf32, #tpu.memory_space<vmem>>, vector<1x2x16xf32>
    %441 = vector.shape_cast %440 : vector<1x2x16xf32> to vector<2x16xf32>
    %442 = vector.shape_cast %432 : vector<2x16xf32> to vector<1x2x16xf32>
    tpu.vector_store %arg7[%439, %c0_192, %c0_193], %442 {strides = array<i32>} : memref<16x2x32xf32, #tpu.memory_space<vmem>>, vector<1x2x16xf32>,
    %c7_i32_194 = arith.constant 7 : i32
    %443 = arith.subi %c7_i32_194, %c4_i32 : i32
    %444 = arith.index_cast %443 : i32 to index
    %c0_195 = arith.constant 0 : index
    %c0_196 = arith.constant 0 : index
    %445 = vector.load %arg2[%444, %c0_195, %c0_196] : memref<8x2x64xf32, #tpu.memory_space<vmem>>, vector<1x2x64xf32>
    %446 = vector.shape_cast %445 : vector<1x2x64xf32> to vector<2x64xf32>
    %c0_197 = arith.constant 0 : index
    %c0_198 = arith.constant 0 : index
    %447 = vector.load %arg10[%c0_197, %c0_198] : memref<2x16xf32, #tpu.memory_space<vmem>>, vector<2x16xf32>
    %c0_199 = arith.constant 0 : index
    %c0_200 = arith.constant 0 : index
    %448 = vector.load %arg6[%c0_199, %c0_200] : memref<16x64xf32, #tpu.memory_space<vmem>>, vector<16x64xf32>
    %cst_201 = arith.constant dense<0.000000e+00> : vector<2x64xf32>
    %449 = tpu.matmul %447, %448, %cst_201 {dimension_numbers = #tpu.dot_dimension_numbers<[1], [0], [0], [1], [0, 0, 1, 1], [], []>} : vector<2x16xf32>, vector<16x64xf32>, vector<2x64xf32> -> vector<2x64xf32>
    %450 = arith.addf %446, %449 : vector<2x64xf32>
    %c0_202 = arith.constant 0 : index
    %c0_203 = arith.constant 0 : index
    %451 = vector.load %arg11[%c0_202, %c0_203] : memref<2x16xf32, #tpu.memory_space<vmem>>, vector<2x16xf32>
    %452 = vector.extract_strided_slice %450 {offsets = [0, 0], sizes = [2, 16], strides = [1, 1]} : vector<2x64xf32> to vector<2x16xf32>
    %453 = arith.negf %452 : vector<2x16xf32>
    %454 = math.exp %453 : vector<2x16xf32>
    %cst_204 = arith.constant 1.000000e+00 : f32
    %455 = vector.broadcast %cst_204 : f32 to vector<2x16xf32>
    %456 = arith.addf %455, %454 : vector<2x16xf32>
    %457 = arith.divf %455, %456 : vector<2x16xf32>
    %458 = vector.extract_strided_slice %450 {offsets = [0, 16], sizes = [2, 16], strides = [1, 1]} : vector<2x64xf32> to vector<2x16xf32>
    %459 = arith.negf %458 : vector<2x16xf32>
    %460 = math.exp %459 : vector<2x16xf32>
    %cst_205 = arith.constant 1.000000e+00 : f32
    %461 = vector.broadcast %cst_205 : f32 to vector<2x16xf32>
    %462 = arith.addf %461, %460 : vector<2x16xf32>
    %463 = arith.divf %461, %462 : vector<2x16xf32>
    %464 = vector.extract_strided_slice %450 {offsets = [0, 32], sizes = [2, 16], strides = [1, 1]} : vector<2x64xf32> to vector<2x16xf32>
    %465 = math.tanh %464 : vector<2x16xf32>
    %466 = vector.extract_strided_slice %450 {offsets = [0, 48], sizes = [2, 16], strides = [1, 1]} : vector<2x64xf32> to vector<2x16xf32>
    %467 = arith.negf %466 : vector<2x16xf32>
    %468 = math.exp %467 : vector<2x16xf32>
    %cst_206 = arith.constant 1.000000e+00 : f32
    %469 = vector.broadcast %cst_206 : f32 to vector<2x16xf32>
    %470 = arith.addf %469, %468 : vector<2x16xf32>
    %471 = arith.divf %469, %470 : vector<2x16xf32>
    %472 = arith.mulf %463, %451 : vector<2x16xf32>
    %473 = arith.mulf %457, %465 : vector<2x16xf32>
    %474 = arith.addf %472, %473 : vector<2x16xf32>
    %475 = math.tanh %474 : vector<2x16xf32>
    %476 = arith.mulf %471, %475 : vector<2x16xf32>
    %477 = arith.index_cast %443 : i32 to index
    %c0_207 = arith.constant 0 : index
    %c0_208 = arith.constant 0 : index
    %478 = vector.load %arg4[%477, %c0_207, %c0_208] : memref<8x2x1xf32, #tpu.memory_space<vmem>>, vector<1x2x1xf32>
    %479 = vector.shape_cast %478 : vector<1x2x1xf32> to vector<2x1xf32>
    %480 = vector.broadcast %479 : vector<2x1xf32> to vector<2x16xf32>
    %481 = arith.mulf %480, %476 : vector<2x16xf32>
    %c0_209 = arith.constant 0 : index
    %c0_210 = arith.constant 0 : index
    %482 = vector.load %arg10[%c0_209, %c0_210] : memref<2x16xf32, #tpu.memory_space<vmem>>, vector<2x16xf32>
    tpu.vector_store %arg10[%c0_209, %c0_210], %481 {strides = array<i32>} : memref<2x16xf32, #tpu.memory_space<vmem>>, vector<2x16xf32>,
    %483 = vector.broadcast %479 : vector<2x1xf32> to vector<2x16xf32>
    %484 = arith.mulf %483, %474 : vector<2x16xf32>
    %c0_211 = arith.constant 0 : index
    %c0_212 = arith.constant 0 : index
    %485 = vector.load %arg11[%c0_211, %c0_212] : memref<2x16xf32, #tpu.memory_space<vmem>>, vector<2x16xf32>
    tpu.vector_store %arg11[%c0_211, %c0_212], %484 {strides = array<i32>} : memref<2x16xf32, #tpu.memory_space<vmem>>, vector<2x16xf32>,
    %c1_i32_213 = arith.constant 1 : i32
    %486 = arith.subi %c1_i32_213, %arg0 : i32
    %c8_i32_214 = arith.constant 8 : i32
    %487 = arith.muli %486, %c8_i32_214 : i32
    %488 = arith.addi %487, %443 : i32
    %489 = arith.index_cast %488 : i32 to index
    %c0_215 = arith.constant 0 : index
    %c16_216 = arith.constant 16 : index
    %490 = vector.load %arg7[%489, %c0_215, %c16_216] : memref<16x2x32xf32, #tpu.memory_space<vmem>>, vector<1x2x16xf32>
    %491 = vector.shape_cast %490 : vector<1x2x16xf32> to vector<2x16xf32>
    %492 = vector.shape_cast %481 : vector<2x16xf32> to vector<1x2x16xf32>
    tpu.vector_store %arg7[%489, %c0_215, %c16_216], %492 {strides = array<i32>} : memref<16x2x32xf32, #tpu.memory_space<vmem>>, vector<1x2x16xf32>,
    %c5_i32 = arith.constant 5 : i32
    %493 = arith.index_cast %c5_i32 : i32 to index
    %c0_217 = arith.constant 0 : index
    %c0_218 = arith.constant 0 : index
    %494 = vector.load %arg1[%493, %c0_217, %c0_218] : memref<8x2x64xf32, #tpu.memory_space<vmem>>, vector<1x2x64xf32>
    %495 = vector.shape_cast %494 : vector<1x2x64xf32> to vector<2x64xf32>
    %c0_219 = arith.constant 0 : index
    %c0_220 = arith.constant 0 : index
    %496 = vector.load %arg8[%c0_219, %c0_220] : memref<2x16xf32, #tpu.memory_space<vmem>>, vector<2x16xf32>
    %c0_221 = arith.constant 0 : index
    %c0_222 = arith.constant 0 : index
    %497 = vector.load %arg5[%c0_221, %c0_222] : memref<16x64xf32, #tpu.memory_space<vmem>>, vector<16x64xf32>
    %cst_223 = arith.constant dense<0.000000e+00> : vector<2x64xf32>
    %498 = tpu.matmul %496, %497, %cst_223 {dimension_numbers = #tpu.dot_dimension_numbers<[1], [0], [0], [1], [0, 0, 1, 1], [], []>} : vector<2x16xf32>, vector<16x64xf32>, vector<2x64xf32> -> vector<2x64xf32>
    %499 = arith.addf %495, %498 : vector<2x64xf32>
    %c0_224 = arith.constant 0 : index
    %c0_225 = arith.constant 0 : index
    %500 = vector.load %arg9[%c0_224, %c0_225] : memref<2x16xf32, #tpu.memory_space<vmem>>, vector<2x16xf32>
    %501 = vector.extract_strided_slice %499 {offsets = [0, 0], sizes = [2, 16], strides = [1, 1]} : vector<2x64xf32> to vector<2x16xf32>
    %502 = arith.negf %501 : vector<2x16xf32>
    %503 = math.exp %502 : vector<2x16xf32>
    %cst_226 = arith.constant 1.000000e+00 : f32
    %504 = vector.broadcast %cst_226 : f32 to vector<2x16xf32>
    %505 = arith.addf %504, %503 : vector<2x16xf32>
    %506 = arith.divf %504, %505 : vector<2x16xf32>
    %507 = vector.extract_strided_slice %499 {offsets = [0, 16], sizes = [2, 16], strides = [1, 1]} : vector<2x64xf32> to vector<2x16xf32>
    %508 = arith.negf %507 : vector<2x16xf32>
    %509 = math.exp %508 : vector<2x16xf32>
    %cst_227 = arith.constant 1.000000e+00 : f32
    %510 = vector.broadcast %cst_227 : f32 to vector<2x16xf32>
    %511 = arith.addf %510, %509 : vector<2x16xf32>
    %512 = arith.divf %510, %511 : vector<2x16xf32>
    %513 = vector.extract_strided_slice %499 {offsets = [0, 32], sizes = [2, 16], strides = [1, 1]} : vector<2x64xf32> to vector<2x16xf32>
    %514 = math.tanh %513 : vector<2x16xf32>
    %515 = vector.extract_strided_slice %499 {offsets = [0, 48], sizes = [2, 16], strides = [1, 1]} : vector<2x64xf32> to vector<2x16xf32>
    %516 = arith.negf %515 : vector<2x16xf32>
    %517 = math.exp %516 : vector<2x16xf32>
    %cst_228 = arith.constant 1.000000e+00 : f32
    %518 = vector.broadcast %cst_228 : f32 to vector<2x16xf32>
    %519 = arith.addf %518, %517 : vector<2x16xf32>
    %520 = arith.divf %518, %519 : vector<2x16xf32>
    %521 = arith.mulf %512, %500 : vector<2x16xf32>
    %522 = arith.mulf %506, %514 : vector<2x16xf32>
    %523 = arith.addf %521, %522 : vector<2x16xf32>
    %524 = math.tanh %523 : vector<2x16xf32>
    %525 = arith.mulf %520, %524 : vector<2x16xf32>
    %526 = arith.index_cast %c5_i32 : i32 to index
    %c0_229 = arith.constant 0 : index
    %c0_230 = arith.constant 0 : index
    %527 = vector.load %arg3[%526, %c0_229, %c0_230] : memref<8x2x1xf32, #tpu.memory_space<vmem>>, vector<1x2x1xf32>
    %528 = vector.shape_cast %527 : vector<1x2x1xf32> to vector<2x1xf32>
    %529 = vector.broadcast %528 : vector<2x1xf32> to vector<2x16xf32>
    %530 = arith.mulf %529, %525 : vector<2x16xf32>
    %c0_231 = arith.constant 0 : index
    %c0_232 = arith.constant 0 : index
    %531 = vector.load %arg8[%c0_231, %c0_232] : memref<2x16xf32, #tpu.memory_space<vmem>>, vector<2x16xf32>
    tpu.vector_store %arg8[%c0_231, %c0_232], %530 {strides = array<i32>} : memref<2x16xf32, #tpu.memory_space<vmem>>, vector<2x16xf32>,
    %532 = vector.broadcast %528 : vector<2x1xf32> to vector<2x16xf32>
    %533 = arith.mulf %532, %523 : vector<2x16xf32>
    %c0_233 = arith.constant 0 : index
    %c0_234 = arith.constant 0 : index
    %534 = vector.load %arg9[%c0_233, %c0_234] : memref<2x16xf32, #tpu.memory_space<vmem>>, vector<2x16xf32>
    tpu.vector_store %arg9[%c0_233, %c0_234], %533 {strides = array<i32>} : memref<2x16xf32, #tpu.memory_space<vmem>>, vector<2x16xf32>,
    %c8_i32_235 = arith.constant 8 : i32
    %535 = arith.muli %arg0, %c8_i32_235 : i32
    %536 = arith.addi %535, %c5_i32 : i32
    %537 = arith.index_cast %536 : i32 to index
    %c0_236 = arith.constant 0 : index
    %c0_237 = arith.constant 0 : index
    %538 = vector.load %arg7[%537, %c0_236, %c0_237] : memref<16x2x32xf32, #tpu.memory_space<vmem>>, vector<1x2x16xf32>
    %539 = vector.shape_cast %538 : vector<1x2x16xf32> to vector<2x16xf32>
    %540 = vector.shape_cast %530 : vector<2x16xf32> to vector<1x2x16xf32>
    tpu.vector_store %arg7[%537, %c0_236, %c0_237], %540 {strides = array<i32>} : memref<16x2x32xf32, #tpu.memory_space<vmem>>, vector<1x2x16xf32>,
    %c7_i32_238 = arith.constant 7 : i32
    %541 = arith.subi %c7_i32_238, %c5_i32 : i32
    %542 = arith.index_cast %541 : i32 to index
    %c0_239 = arith.constant 0 : index
    %c0_240 = arith.constant 0 : index
    %543 = vector.load %arg2[%542, %c0_239, %c0_240] : memref<8x2x64xf32, #tpu.memory_space<vmem>>, vector<1x2x64xf32>
    %544 = vector.shape_cast %543 : vector<1x2x64xf32> to vector<2x64xf32>
    %c0_241 = arith.constant 0 : index
    %c0_242 = arith.constant 0 : index
    %545 = vector.load %arg10[%c0_241, %c0_242] : memref<2x16xf32, #tpu.memory_space<vmem>>, vector<2x16xf32>
    %c0_243 = arith.constant 0 : index
    %c0_244 = arith.constant 0 : index
    %546 = vector.load %arg6[%c0_243, %c0_244] : memref<16x64xf32, #tpu.memory_space<vmem>>, vector<16x64xf32>
    %cst_245 = arith.constant dense<0.000000e+00> : vector<2x64xf32>
    %547 = tpu.matmul %545, %546, %cst_245 {dimension_numbers = #tpu.dot_dimension_numbers<[1], [0], [0], [1], [0, 0, 1, 1], [], []>} : vector<2x16xf32>, vector<16x64xf32>, vector<2x64xf32> -> vector<2x64xf32>
    %548 = arith.addf %544, %547 : vector<2x64xf32>
    %c0_246 = arith.constant 0 : index
    %c0_247 = arith.constant 0 : index
    %549 = vector.load %arg11[%c0_246, %c0_247] : memref<2x16xf32, #tpu.memory_space<vmem>>, vector<2x16xf32>
    %550 = vector.extract_strided_slice %548 {offsets = [0, 0], sizes = [2, 16], strides = [1, 1]} : vector<2x64xf32> to vector<2x16xf32>
    %551 = arith.negf %550 : vector<2x16xf32>
    %552 = math.exp %551 : vector<2x16xf32>
    %cst_248 = arith.constant 1.000000e+00 : f32
    %553 = vector.broadcast %cst_248 : f32 to vector<2x16xf32>
    %554 = arith.addf %553, %552 : vector<2x16xf32>
    %555 = arith.divf %553, %554 : vector<2x16xf32>
    %556 = vector.extract_strided_slice %548 {offsets = [0, 16], sizes = [2, 16], strides = [1, 1]} : vector<2x64xf32> to vector<2x16xf32>
    %557 = arith.negf %556 : vector<2x16xf32>
    %558 = math.exp %557 : vector<2x16xf32>
    %cst_249 = arith.constant 1.000000e+00 : f32
    %559 = vector.broadcast %cst_249 : f32 to vector<2x16xf32>
    %560 = arith.addf %559, %558 : vector<2x16xf32>
    %561 = arith.divf %559, %560 : vector<2x16xf32>
    %562 = vector.extract_strided_slice %548 {offsets = [0, 32], sizes = [2, 16], strides = [1, 1]} : vector<2x64xf32> to vector<2x16xf32>
    %563 = math.tanh %562 : vector<2x16xf32>
    %564 = vector.extract_strided_slice %548 {offsets = [0, 48], sizes = [2, 16], strides = [1, 1]} : vector<2x64xf32> to vector<2x16xf32>
    %565 = arith.negf %564 : vector<2x16xf32>
    %566 = math.exp %565 : vector<2x16xf32>
    %cst_250 = arith.constant 1.000000e+00 : f32
    %567 = vector.broadcast %cst_250 : f32 to vector<2x16xf32>
    %568 = arith.addf %567, %566 : vector<2x16xf32>
    %569 = arith.divf %567, %568 : vector<2x16xf32>
    %570 = arith.mulf %561, %549 : vector<2x16xf32>
    %571 = arith.mulf %555, %563 : vector<2x16xf32>
    %572 = arith.addf %570, %571 : vector<2x16xf32>
    %573 = math.tanh %572 : vector<2x16xf32>
    %574 = arith.mulf %569, %573 : vector<2x16xf32>
    %575 = arith.index_cast %541 : i32 to index
    %c0_251 = arith.constant 0 : index
    %c0_252 = arith.constant 0 : index
    %576 = vector.load %arg4[%575, %c0_251, %c0_252] : memref<8x2x1xf32, #tpu.memory_space<vmem>>, vector<1x2x1xf32>
    %577 = vector.shape_cast %576 : vector<1x2x1xf32> to vector<2x1xf32>
    %578 = vector.broadcast %577 : vector<2x1xf32> to vector<2x16xf32>
    %579 = arith.mulf %578, %574 : vector<2x16xf32>
    %c0_253 = arith.constant 0 : index
    %c0_254 = arith.constant 0 : index
    %580 = vector.load %arg10[%c0_253, %c0_254] : memref<2x16xf32, #tpu.memory_space<vmem>>, vector<2x16xf32>
    tpu.vector_store %arg10[%c0_253, %c0_254], %579 {strides = array<i32>} : memref<2x16xf32, #tpu.memory_space<vmem>>, vector<2x16xf32>,
    %581 = vector.broadcast %577 : vector<2x1xf32> to vector<2x16xf32>
    %582 = arith.mulf %581, %572 : vector<2x16xf32>
    %c0_255 = arith.constant 0 : index
    %c0_256 = arith.constant 0 : index
    %583 = vector.load %arg11[%c0_255, %c0_256] : memref<2x16xf32, #tpu.memory_space<vmem>>, vector<2x16xf32>
    tpu.vector_store %arg11[%c0_255, %c0_256], %582 {strides = array<i32>} : memref<2x16xf32, #tpu.memory_space<vmem>>, vector<2x16xf32>,
    %c1_i32_257 = arith.constant 1 : i32
    %584 = arith.subi %c1_i32_257, %arg0 : i32
    %c8_i32_258 = arith.constant 8 : i32
    %585 = arith.muli %584, %c8_i32_258 : i32
    %586 = arith.addi %585, %541 : i32
    %587 = arith.index_cast %586 : i32 to index
    %c0_259 = arith.constant 0 : index
    %c16_260 = arith.constant 16 : index
    %588 = vector.load %arg7[%587, %c0_259, %c16_260] : memref<16x2x32xf32, #tpu.memory_space<vmem>>, vector<1x2x16xf32>
    %589 = vector.shape_cast %588 : vector<1x2x16xf32> to vector<2x16xf32>
    %590 = vector.shape_cast %579 : vector<2x16xf32> to vector<1x2x16xf32>
    tpu.vector_store %arg7[%587, %c0_259, %c16_260], %590 {strides = array<i32>} : memref<16x2x32xf32, #tpu.memory_space<vmem>>, vector<1x2x16xf32>,
    %c6_i32 = arith.constant 6 : i32
    %591 = arith.index_cast %c6_i32 : i32 to index
    %c0_261 = arith.constant 0 : index
    %c0_262 = arith.constant 0 : index
    %592 = vector.load %arg1[%591, %c0_261, %c0_262] : memref<8x2x64xf32, #tpu.memory_space<vmem>>, vector<1x2x64xf32>
    %593 = vector.shape_cast %592 : vector<1x2x64xf32> to vector<2x64xf32>
    %c0_263 = arith.constant 0 : index
    %c0_264 = arith.constant 0 : index
    %594 = vector.load %arg8[%c0_263, %c0_264] : memref<2x16xf32, #tpu.memory_space<vmem>>, vector<2x16xf32>
    %c0_265 = arith.constant 0 : index
    %c0_266 = arith.constant 0 : index
    %595 = vector.load %arg5[%c0_265, %c0_266] : memref<16x64xf32, #tpu.memory_space<vmem>>, vector<16x64xf32>
    %cst_267 = arith.constant dense<0.000000e+00> : vector<2x64xf32>
    %596 = tpu.matmul %594, %595, %cst_267 {dimension_numbers = #tpu.dot_dimension_numbers<[1], [0], [0], [1], [0, 0, 1, 1], [], []>} : vector<2x16xf32>, vector<16x64xf32>, vector<2x64xf32> -> vector<2x64xf32>
    %597 = arith.addf %593, %596 : vector<2x64xf32>
    %c0_268 = arith.constant 0 : index
    %c0_269 = arith.constant 0 : index
    %598 = vector.load %arg9[%c0_268, %c0_269] : memref<2x16xf32, #tpu.memory_space<vmem>>, vector<2x16xf32>
    %599 = vector.extract_strided_slice %597 {offsets = [0, 0], sizes = [2, 16], strides = [1, 1]} : vector<2x64xf32> to vector<2x16xf32>
    %600 = arith.negf %599 : vector<2x16xf32>
    %601 = math.exp %600 : vector<2x16xf32>
    %cst_270 = arith.constant 1.000000e+00 : f32
    %602 = vector.broadcast %cst_270 : f32 to vector<2x16xf32>
    %603 = arith.addf %602, %601 : vector<2x16xf32>
    %604 = arith.divf %602, %603 : vector<2x16xf32>
    %605 = vector.extract_strided_slice %597 {offsets = [0, 16], sizes = [2, 16], strides = [1, 1]} : vector<2x64xf32> to vector<2x16xf32>
    %606 = arith.negf %605 : vector<2x16xf32>
    %607 = math.exp %606 : vector<2x16xf32>
    %cst_271 = arith.constant 1.000000e+00 : f32
    %608 = vector.broadcast %cst_271 : f32 to vector<2x16xf32>
    %609 = arith.addf %608, %607 : vector<2x16xf32>
    %610 = arith.divf %608, %609 : vector<2x16xf32>
    %611 = vector.extract_strided_slice %597 {offsets = [0, 32], sizes = [2, 16], strides = [1, 1]} : vector<2x64xf32> to vector<2x16xf32>
    %612 = math.tanh %611 : vector<2x16xf32>
    %613 = vector.extract_strided_slice %597 {offsets = [0, 48], sizes = [2, 16], strides = [1, 1]} : vector<2x64xf32> to vector<2x16xf32>
    %614 = arith.negf %613 : vector<2x16xf32>
    %615 = math.exp %614 : vector<2x16xf32>
    %cst_272 = arith.constant 1.000000e+00 : f32
    %616 = vector.broadcast %cst_272 : f32 to vector<2x16xf32>
    %617 = arith.addf %616, %615 : vector<2x16xf32>
    %618 = arith.divf %616, %617 : vector<2x16xf32>
    %619 = arith.mulf %610, %598 : vector<2x16xf32>
    %620 = arith.mulf %604, %612 : vector<2x16xf32>
    %621 = arith.addf %619, %620 : vector<2x16xf32>
    %622 = math.tanh %621 : vector<2x16xf32>
    %623 = arith.mulf %618, %622 : vector<2x16xf32>
    %624 = arith.index_cast %c6_i32 : i32 to index
    %c0_273 = arith.constant 0 : index
    %c0_274 = arith.constant 0 : index
    %625 = vector.load %arg3[%624, %c0_273, %c0_274] : memref<8x2x1xf32, #tpu.memory_space<vmem>>, vector<1x2x1xf32>
    %626 = vector.shape_cast %625 : vector<1x2x1xf32> to vector<2x1xf32>
    %627 = vector.broadcast %626 : vector<2x1xf32> to vector<2x16xf32>
    %628 = arith.mulf %627, %623 : vector<2x16xf32>
    %c0_275 = arith.constant 0 : index
    %c0_276 = arith.constant 0 : index
    %629 = vector.load %arg8[%c0_275, %c0_276] : memref<2x16xf32, #tpu.memory_space<vmem>>, vector<2x16xf32>
    tpu.vector_store %arg8[%c0_275, %c0_276], %628 {strides = array<i32>} : memref<2x16xf32, #tpu.memory_space<vmem>>, vector<2x16xf32>,
    %630 = vector.broadcast %626 : vector<2x1xf32> to vector<2x16xf32>
    %631 = arith.mulf %630, %621 : vector<2x16xf32>
    %c0_277 = arith.constant 0 : index
    %c0_278 = arith.constant 0 : index
    %632 = vector.load %arg9[%c0_277, %c0_278] : memref<2x16xf32, #tpu.memory_space<vmem>>, vector<2x16xf32>
    tpu.vector_store %arg9[%c0_277, %c0_278], %631 {strides = array<i32>} : memref<2x16xf32, #tpu.memory_space<vmem>>, vector<2x16xf32>,
    %c8_i32_279 = arith.constant 8 : i32
    %633 = arith.muli %arg0, %c8_i32_279 : i32
    %634 = arith.addi %633, %c6_i32 : i32
    %635 = arith.index_cast %634 : i32 to index
    %c0_280 = arith.constant 0 : index
    %c0_281 = arith.constant 0 : index
    %636 = vector.load %arg7[%635, %c0_280, %c0_281] : memref<16x2x32xf32, #tpu.memory_space<vmem>>, vector<1x2x16xf32>
    %637 = vector.shape_cast %636 : vector<1x2x16xf32> to vector<2x16xf32>
    %638 = vector.shape_cast %628 : vector<2x16xf32> to vector<1x2x16xf32>
    tpu.vector_store %arg7[%635, %c0_280, %c0_281], %638 {strides = array<i32>} : memref<16x2x32xf32, #tpu.memory_space<vmem>>, vector<1x2x16xf32>,
    %c7_i32_282 = arith.constant 7 : i32
    %639 = arith.subi %c7_i32_282, %c6_i32 : i32
    %640 = arith.index_cast %639 : i32 to index
    %c0_283 = arith.constant 0 : index
    %c0_284 = arith.constant 0 : index
    %641 = vector.load %arg2[%640, %c0_283, %c0_284] : memref<8x2x64xf32, #tpu.memory_space<vmem>>, vector<1x2x64xf32>
    %642 = vector.shape_cast %641 : vector<1x2x64xf32> to vector<2x64xf32>
    %c0_285 = arith.constant 0 : index
    %c0_286 = arith.constant 0 : index
    %643 = vector.load %arg10[%c0_285, %c0_286] : memref<2x16xf32, #tpu.memory_space<vmem>>, vector<2x16xf32>
    %c0_287 = arith.constant 0 : index
    %c0_288 = arith.constant 0 : index
    %644 = vector.load %arg6[%c0_287, %c0_288] : memref<16x64xf32, #tpu.memory_space<vmem>>, vector<16x64xf32>
    %cst_289 = arith.constant dense<0.000000e+00> : vector<2x64xf32>
    %645 = tpu.matmul %643, %644, %cst_289 {dimension_numbers = #tpu.dot_dimension_numbers<[1], [0], [0], [1], [0, 0, 1, 1], [], []>} : vector<2x16xf32>, vector<16x64xf32>, vector<2x64xf32> -> vector<2x64xf32>
    %646 = arith.addf %642, %645 : vector<2x64xf32>
    %c0_290 = arith.constant 0 : index
    %c0_291 = arith.constant 0 : index
    %647 = vector.load %arg11[%c0_290, %c0_291] : memref<2x16xf32, #tpu.memory_space<vmem>>, vector<2x16xf32>
    %648 = vector.extract_strided_slice %646 {offsets = [0, 0], sizes = [2, 16], strides = [1, 1]} : vector<2x64xf32> to vector<2x16xf32>
    %649 = arith.negf %648 : vector<2x16xf32>
    %650 = math.exp %649 : vector<2x16xf32>
    %cst_292 = arith.constant 1.000000e+00 : f32
    %651 = vector.broadcast %cst_292 : f32 to vector<2x16xf32>
    %652 = arith.addf %651, %650 : vector<2x16xf32>
    %653 = arith.divf %651, %652 : vector<2x16xf32>
    %654 = vector.extract_strided_slice %646 {offsets = [0, 16], sizes = [2, 16], strides = [1, 1]} : vector<2x64xf32> to vector<2x16xf32>
    %655 = arith.negf %654 : vector<2x16xf32>
    %656 = math.exp %655 : vector<2x16xf32>
    %cst_293 = arith.constant 1.000000e+00 : f32
    %657 = vector.broadcast %cst_293 : f32 to vector<2x16xf32>
    %658 = arith.addf %657, %656 : vector<2x16xf32>
    %659 = arith.divf %657, %658 : vector<2x16xf32>
    %660 = vector.extract_strided_slice %646 {offsets = [0, 32], sizes = [2, 16], strides = [1, 1]} : vector<2x64xf32> to vector<2x16xf32>
    %661 = math.tanh %660 : vector<2x16xf32>
    %662 = vector.extract_strided_slice %646 {offsets = [0, 48], sizes = [2, 16], strides = [1, 1]} : vector<2x64xf32> to vector<2x16xf32>
    %663 = arith.negf %662 : vector<2x16xf32>
    %664 = math.exp %663 : vector<2x16xf32>
    %cst_294 = arith.constant 1.000000e+00 : f32
    %665 = vector.broadcast %cst_294 : f32 to vector<2x16xf32>
    %666 = arith.addf %665, %664 : vector<2x16xf32>
    %667 = arith.divf %665, %666 : vector<2x16xf32>
    %668 = arith.mulf %659, %647 : vector<2x16xf32>
    %669 = arith.mulf %653, %661 : vector<2x16xf32>
    %670 = arith.addf %668, %669 : vector<2x16xf32>
    %671 = math.tanh %670 : vector<2x16xf32>
    %672 = arith.mulf %667, %671 : vector<2x16xf32>
    %673 = arith.index_cast %639 : i32 to index
    %c0_295 = arith.constant 0 : index
    %c0_296 = arith.constant 0 : index
    %674 = vector.load %arg4[%673, %c0_295, %c0_296] : memref<8x2x1xf32, #tpu.memory_space<vmem>>, vector<1x2x1xf32>
    %675 = vector.shape_cast %674 : vector<1x2x1xf32> to vector<2x1xf32>
    %676 = vector.broadcast %675 : vector<2x1xf32> to vector<2x16xf32>
    %677 = arith.mulf %676, %672 : vector<2x16xf32>
    %c0_297 = arith.constant 0 : index
    %c0_298 = arith.constant 0 : index
    %678 = vector.load %arg10[%c0_297, %c0_298] : memref<2x16xf32, #tpu.memory_space<vmem>>, vector<2x16xf32>
    tpu.vector_store %arg10[%c0_297, %c0_298], %677 {strides = array<i32>} : memref<2x16xf32, #tpu.memory_space<vmem>>, vector<2x16xf32>,
    %679 = vector.broadcast %675 : vector<2x1xf32> to vector<2x16xf32>
    %680 = arith.mulf %679, %670 : vector<2x16xf32>
    %c0_299 = arith.constant 0 : index
    %c0_300 = arith.constant 0 : index
    %681 = vector.load %arg11[%c0_299, %c0_300] : memref<2x16xf32, #tpu.memory_space<vmem>>, vector<2x16xf32>
    tpu.vector_store %arg11[%c0_299, %c0_300], %680 {strides = array<i32>} : memref<2x16xf32, #tpu.memory_space<vmem>>, vector<2x16xf32>,
    %c1_i32_301 = arith.constant 1 : i32
    %682 = arith.subi %c1_i32_301, %arg0 : i32
    %c8_i32_302 = arith.constant 8 : i32
    %683 = arith.muli %682, %c8_i32_302 : i32
    %684 = arith.addi %683, %639 : i32
    %685 = arith.index_cast %684 : i32 to index
    %c0_303 = arith.constant 0 : index
    %c16_304 = arith.constant 16 : index
    %686 = vector.load %arg7[%685, %c0_303, %c16_304] : memref<16x2x32xf32, #tpu.memory_space<vmem>>, vector<1x2x16xf32>
    %687 = vector.shape_cast %686 : vector<1x2x16xf32> to vector<2x16xf32>
    %688 = vector.shape_cast %677 : vector<2x16xf32> to vector<1x2x16xf32>
    tpu.vector_store %arg7[%685, %c0_303, %c16_304], %688 {strides = array<i32>} : memref<16x2x32xf32, #tpu.memory_space<vmem>>, vector<1x2x16xf32>,
    %c7_i32_305 = arith.constant 7 : i32
    %689 = arith.index_cast %c7_i32_305 : i32 to index
    %c0_306 = arith.constant 0 : index
    %c0_307 = arith.constant 0 : index
    %690 = vector.load %arg1[%689, %c0_306, %c0_307] : memref<8x2x64xf32, #tpu.memory_space<vmem>>, vector<1x2x64xf32>
    %691 = vector.shape_cast %690 : vector<1x2x64xf32> to vector<2x64xf32>
    %c0_308 = arith.constant 0 : index
    %c0_309 = arith.constant 0 : index
    %692 = vector.load %arg8[%c0_308, %c0_309] : memref<2x16xf32, #tpu.memory_space<vmem>>, vector<2x16xf32>
    %c0_310 = arith.constant 0 : index
    %c0_311 = arith.constant 0 : index
    %693 = vector.load %arg5[%c0_310, %c0_311] : memref<16x64xf32, #tpu.memory_space<vmem>>, vector<16x64xf32>
    %cst_312 = arith.constant dense<0.000000e+00> : vector<2x64xf32>
    %694 = tpu.matmul %692, %693, %cst_312 {dimension_numbers = #tpu.dot_dimension_numbers<[1], [0], [0], [1], [0, 0, 1, 1], [], []>} : vector<2x16xf32>, vector<16x64xf32>, vector<2x64xf32> -> vector<2x64xf32>
    %695 = arith.addf %691, %694 : vector<2x64xf32>
    %c0_313 = arith.constant 0 : index
    %c0_314 = arith.constant 0 : index
    %696 = vector.load %arg9[%c0_313, %c0_314] : memref<2x16xf32, #tpu.memory_space<vmem>>, vector<2x16xf32>
    %697 = vector.extract_strided_slice %695 {offsets = [0, 0], sizes = [2, 16], strides = [1, 1]} : vector<2x64xf32> to vector<2x16xf32>
    %698 = arith.negf %697 : vector<2x16xf32>
    %699 = math.exp %698 : vector<2x16xf32>
    %cst_315 = arith.constant 1.000000e+00 : f32
    %700 = vector.broadcast %cst_315 : f32 to vector<2x16xf32>
    %701 = arith.addf %700, %699 : vector<2x16xf32>
    %702 = arith.divf %700, %701 : vector<2x16xf32>
    %703 = vector.extract_strided_slice %695 {offsets = [0, 16], sizes = [2, 16], strides = [1, 1]} : vector<2x64xf32> to vector<2x16xf32>
    %704 = arith.negf %703 : vector<2x16xf32>
    %705 = math.exp %704 : vector<2x16xf32>
    %cst_316 = arith.constant 1.000000e+00 : f32
    %706 = vector.broadcast %cst_316 : f32 to vector<2x16xf32>
    %707 = arith.addf %706, %705 : vector<2x16xf32>
    %708 = arith.divf %706, %707 : vector<2x16xf32>
    %709 = vector.extract_strided_slice %695 {offsets = [0, 32], sizes = [2, 16], strides = [1, 1]} : vector<2x64xf32> to vector<2x16xf32>
    %710 = math.tanh %709 : vector<2x16xf32>
    %711 = vector.extract_strided_slice %695 {offsets = [0, 48], sizes = [2, 16], strides = [1, 1]} : vector<2x64xf32> to vector<2x16xf32>
    %712 = arith.negf %711 : vector<2x16xf32>
    %713 = math.exp %712 : vector<2x16xf32>
    %cst_317 = arith.constant 1.000000e+00 : f32
    %714 = vector.broadcast %cst_317 : f32 to vector<2x16xf32>
    %715 = arith.addf %714, %713 : vector<2x16xf32>
    %716 = arith.divf %714, %715 : vector<2x16xf32>
    %717 = arith.mulf %708, %696 : vector<2x16xf32>
    %718 = arith.mulf %702, %710 : vector<2x16xf32>
    %719 = arith.addf %717, %718 : vector<2x16xf32>
    %720 = math.tanh %719 : vector<2x16xf32>
    %721 = arith.mulf %716, %720 : vector<2x16xf32>
    %722 = arith.index_cast %c7_i32_305 : i32 to index
    %c0_318 = arith.constant 0 : index
    %c0_319 = arith.constant 0 : index
    %723 = vector.load %arg3[%722, %c0_318, %c0_319] : memref<8x2x1xf32, #tpu.memory_space<vmem>>, vector<1x2x1xf32>
    %724 = vector.shape_cast %723 : vector<1x2x1xf32> to vector<2x1xf32>
    %725 = vector.broadcast %724 : vector<2x1xf32> to vector<2x16xf32>
    %726 = arith.mulf %725, %721 : vector<2x16xf32>
    %c0_320 = arith.constant 0 : index
    %c0_321 = arith.constant 0 : index
    %727 = vector.load %arg8[%c0_320, %c0_321] : memref<2x16xf32, #tpu.memory_space<vmem>>, vector<2x16xf32>
    tpu.vector_store %arg8[%c0_320, %c0_321], %726 {strides = array<i32>} : memref<2x16xf32, #tpu.memory_space<vmem>>, vector<2x16xf32>,
    %728 = vector.broadcast %724 : vector<2x1xf32> to vector<2x16xf32>
    %729 = arith.mulf %728, %719 : vector<2x16xf32>
    %c0_322 = arith.constant 0 : index
    %c0_323 = arith.constant 0 : index
    %730 = vector.load %arg9[%c0_322, %c0_323] : memref<2x16xf32, #tpu.memory_space<vmem>>, vector<2x16xf32>
    tpu.vector_store %arg9[%c0_322, %c0_323], %729 {strides = array<i32>} : memref<2x16xf32, #tpu.memory_space<vmem>>, vector<2x16xf32>,
    %c8_i32_324 = arith.constant 8 : i32
    %731 = arith.muli %arg0, %c8_i32_324 : i32
    %732 = arith.addi %731, %c7_i32_305 : i32
    %733 = arith.index_cast %732 : i32 to index
    %c0_325 = arith.constant 0 : index
    %c0_326 = arith.constant 0 : index
    %734 = vector.load %arg7[%733, %c0_325, %c0_326] : memref<16x2x32xf32, #tpu.memory_space<vmem>>, vector<1x2x16xf32>
    %735 = vector.shape_cast %734 : vector<1x2x16xf32> to vector<2x16xf32>
    %736 = vector.shape_cast %726 : vector<2x16xf32> to vector<1x2x16xf32>
    tpu.vector_store %arg7[%733, %c0_325, %c0_326], %736 {strides = array<i32>} : memref<16x2x32xf32, #tpu.memory_space<vmem>>, vector<1x2x16xf32>,
    %c7_i32_327 = arith.constant 7 : i32
    %737 = arith.subi %c7_i32_327, %c7_i32_305 : i32
    %738 = arith.index_cast %737 : i32 to index
    %c0_328 = arith.constant 0 : index
    %c0_329 = arith.constant 0 : index
    %739 = vector.load %arg2[%738, %c0_328, %c0_329] : memref<8x2x64xf32, #tpu.memory_space<vmem>>, vector<1x2x64xf32>
    %740 = vector.shape_cast %739 : vector<1x2x64xf32> to vector<2x64xf32>
    %c0_330 = arith.constant 0 : index
    %c0_331 = arith.constant 0 : index
    %741 = vector.load %arg10[%c0_330, %c0_331] : memref<2x16xf32, #tpu.memory_space<vmem>>, vector<2x16xf32>
    %c0_332 = arith.constant 0 : index
    %c0_333 = arith.constant 0 : index
    %742 = vector.load %arg6[%c0_332, %c0_333] : memref<16x64xf32, #tpu.memory_space<vmem>>, vector<16x64xf32>
    %cst_334 = arith.constant dense<0.000000e+00> : vector<2x64xf32>
    %743 = tpu.matmul %741, %742, %cst_334 {dimension_numbers = #tpu.dot_dimension_numbers<[1], [0], [0], [1], [0, 0, 1, 1], [], []>} : vector<2x16xf32>, vector<16x64xf32>, vector<2x64xf32> -> vector<2x64xf32>
    %744 = arith.addf %740, %743 : vector<2x64xf32>
    %c0_335 = arith.constant 0 : index
    %c0_336 = arith.constant 0 : index
    %745 = vector.load %arg11[%c0_335, %c0_336] : memref<2x16xf32, #tpu.memory_space<vmem>>, vector<2x16xf32>
    %746 = vector.extract_strided_slice %744 {offsets = [0, 0], sizes = [2, 16], strides = [1, 1]} : vector<2x64xf32> to vector<2x16xf32>
    %747 = arith.negf %746 : vector<2x16xf32>
    %748 = math.exp %747 : vector<2x16xf32>
    %cst_337 = arith.constant 1.000000e+00 : f32
    %749 = vector.broadcast %cst_337 : f32 to vector<2x16xf32>
    %750 = arith.addf %749, %748 : vector<2x16xf32>
    %751 = arith.divf %749, %750 : vector<2x16xf32>
    %752 = vector.extract_strided_slice %744 {offsets = [0, 16], sizes = [2, 16], strides = [1, 1]} : vector<2x64xf32> to vector<2x16xf32>
    %753 = arith.negf %752 : vector<2x16xf32>
    %754 = math.exp %753 : vector<2x16xf32>
    %cst_338 = arith.constant 1.000000e+00 : f32
    %755 = vector.broadcast %cst_338 : f32 to vector<2x16xf32>
    %756 = arith.addf %755, %754 : vector<2x16xf32>
    %757 = arith.divf %755, %756 : vector<2x16xf32>
    %758 = vector.extract_strided_slice %744 {offsets = [0, 32], sizes = [2, 16], strides = [1, 1]} : vector<2x64xf32> to vector<2x16xf32>
    %759 = math.tanh %758 : vector<2x16xf32>
    %760 = vector.extract_strided_slice %744 {offsets = [0, 48], sizes = [2, 16], strides = [1, 1]} : vector<2x64xf32> to vector<2x16xf32>
    %761 = arith.negf %760 : vector<2x16xf32>
    %762 = math.exp %761 : vector<2x16xf32>
    %cst_339 = arith.constant 1.000000e+00 : f32
    %763 = vector.broadcast %cst_339 : f32 to vector<2x16xf32>
    %764 = arith.addf %763, %762 : vector<2x16xf32>
    %765 = arith.divf %763, %764 : vector<2x16xf32>
    %766 = arith.mulf %757, %745 : vector<2x16xf32>
    %767 = arith.mulf %751, %759 : vector<2x16xf32>
    %768 = arith.addf %766, %767 : vector<2x16xf32>
    %769 = math.tanh %768 : vector<2x16xf32>
    %770 = arith.mulf %765, %769 : vector<2x16xf32>
    %771 = arith.index_cast %737 : i32 to index
    %c0_340 = arith.constant 0 : index
    %c0_341 = arith.constant 0 : index
    %772 = vector.load %arg4[%771, %c0_340, %c0_341] : memref<8x2x1xf32, #tpu.memory_space<vmem>>, vector<1x2x1xf32>
    %773 = vector.shape_cast %772 : vector<1x2x1xf32> to vector<2x1xf32>
    %774 = vector.broadcast %773 : vector<2x1xf32> to vector<2x16xf32>
    %775 = arith.mulf %774, %770 : vector<2x16xf32>
    %c0_342 = arith.constant 0 : index
    %c0_343 = arith.constant 0 : index
    %776 = vector.load %arg10[%c0_342, %c0_343] : memref<2x16xf32, #tpu.memory_space<vmem>>, vector<2x16xf32>
    tpu.vector_store %arg10[%c0_342, %c0_343], %775 {strides = array<i32>} : memref<2x16xf32, #tpu.memory_space<vmem>>, vector<2x16xf32>,
    %777 = vector.broadcast %773 : vector<2x1xf32> to vector<2x16xf32>
    %778 = arith.mulf %777, %768 : vector<2x16xf32>
    %c0_344 = arith.constant 0 : index
    %c0_345 = arith.constant 0 : index
    %779 = vector.load %arg11[%c0_344, %c0_345] : memref<2x16xf32, #tpu.memory_space<vmem>>, vector<2x16xf32>
    tpu.vector_store %arg11[%c0_344, %c0_345], %778 {strides = array<i32>} : memref<2x16xf32, #tpu.memory_space<vmem>>, vector<2x16xf32>,
    %c1_i32_346 = arith.constant 1 : i32
    %780 = arith.subi %c1_i32_346, %arg0 : i32
    %c8_i32_347 = arith.constant 8 : i32
    %781 = arith.muli %780, %c8_i32_347 : i32
    %782 = arith.addi %781, %737 : i32
    %783 = arith.index_cast %782 : i32 to index
    %c0_348 = arith.constant 0 : index
    %c16_349 = arith.constant 16 : index
    %784 = vector.load %arg7[%783, %c0_348, %c16_349] : memref<16x2x32xf32, #tpu.memory_space<vmem>>, vector<1x2x16xf32>
    %785 = vector.shape_cast %784 : vector<1x2x16xf32> to vector<2x16xf32>
    %786 = vector.shape_cast %775 : vector<2x16xf32> to vector<1x2x16xf32>
    tpu.vector_store %arg7[%783, %c0_348, %c16_349], %786 {strides = array<i32>} : memref<16x2x32xf32, #tpu.memory_space<vmem>>, vector<1x2x16xf32>,
    %c8_i32_350 = arith.constant 8 : i32
    return
  }
  func.func @transform_0(%arg0: i32) -> (i32, i32, i32) {
    %c0_i32 = arith.constant 0 : i32
    %c0_i32_0 = arith.constant 0 : i32
    %c0_i32_1 = arith.constant 0 : i32
    return %arg0, %c0_i32, %c0_i32_0 : i32, i32, i32
  }
  func.func @transform_1(%arg0: i32) -> (i32, i32, i32) {
    %c1_i32 = arith.constant 1 : i32
    %0 = arith.subi %c1_i32, %arg0 : i32
    %c0_i32 = arith.constant 0 : i32
    %c0_i32_0 = arith.constant 0 : i32
    %c0_i32_1 = arith.constant 0 : i32
    return %0, %c0_i32, %c0_i32_0 : i32, i32, i32
  }
  func.func @transform_2(%arg0: i32) -> (i32, i32, i32) {
    %c0_i32 = arith.constant 0 : i32
    %c0_i32_0 = arith.constant 0 : i32
    %c0_i32_1 = arith.constant 0 : i32
    return %arg0, %c0_i32, %c0_i32_0 : i32, i32, i32
  }
  func.func @transform_3(%arg0: i32) -> (i32, i32, i32) {
    %c1_i32 = arith.constant 1 : i32
    %0 = arith.subi %c1_i32, %arg0 : i32
    %c0_i32 = arith.constant 0 : i32
    %c0_i32_0 = arith.constant 0 : i32
    %c0_i32_1 = arith.constant 0 : i32
    return %0, %c0_i32, %c0_i32_0 : i32, i32, i32
  }
  func.func @transform_4(%arg0: i32) -> (i32, i32) {
    %c0_i32 = arith.constant 0 : i32
    %c0_i32_0 = arith.constant 0 : i32
    %c0_i32_1 = arith.constant 0 : i32
    return %c0_i32, %c0_i32_0 : i32, i32
  }
  func.func @transform_5(%arg0: i32) -> (i32, i32) {
    %c0_i32 = arith.constant 0 : i32
    %c0_i32_0 = arith.constant 0 : i32
    %c0_i32_1 = arith.constant 0 : i32
    return %c0_i32, %c0_i32_0 : i32, i32
  }
  func.func @transform_6(%arg0: i32) -> (i32, i32, i32) {
    %c0_i32 = arith.constant 0 : i32
    %c0_i32_0 = arith.constant 0 : i32
    %c0_i32_1 = arith.constant 0 : i32
    %c0_i32_2 = arith.constant 0 : i32
    return %c0_i32, %c0_i32_0, %c0_i32_1 : i32, i32, i32
  }
}

</mosaic_0001>

<bundles_post_ra>
// kernel: lstm_encoder_forward.2
= control target key start
LH: loop header
LB: loop body
LE: loop exit
PB: predicated region body
PF: predicated region fallthrough
CT: control target
= control target key end

     0   :  { %s3118_s21 = smov 0   ;;  %s3525_s0 = inlined_call_operand.vmem [shape: f32[16,2,64], index: 0, kind: input, shape index: {}]   ;;  %s3526_s1 = inlined_call_operand.vmem [shape: f32[16,2,64], index: 1, kind: input, shape index: {}]   ;;  %s3527_s2 = inlined_call_operand.vmem [shape: f32[16,2,1], index: 2, kind: input, shape index: {}, may-alias: {2,3}]   ;;  %s3528_s3 = inlined_call_operand.vmem [shape: f32[16,2,1], index: 3, kind: input, shape index: {}, may-alias: {2,3}]   ;;  %s3529_s4 = inlined_call_operand.vmem [shape: f32[16,64], index: 4, kind: input, shape index: {}]   ;;  %s3530_s5 = inlined_call_operand.vmem [shape: f32[16,64], index: 5, kind: input, shape index: {}]   ;;  %s3531_s6 = inlined_call_operand.vmem [shape: f32[16,2,32], index: 6, kind: output, shape index: {}]  }
   0x1 LB: > { %s3124_s22 = sadd.s32 4294967295, %s3071_s21   ;;  %p2575_p0 = scmp.ge.s32.totalorder %s3071_s21, 1  ;;  %s3071_s21 = sphi %s3118_s21, %s16_s21  }
   0x2   : > { %p249_p1 = scmp.lt.s32.totalorder %s3071_s21, 3 }
   0x4   : > { %p250_p2 = pnand %p2575_p0, %p249_p1 }
   0x5   : > { %s2576_s23 = sshll.u32 (!%p250_p2), %s3124_s22, 3  ;;  %s297_s24 = ssub.s32 (!%p250_p2), 1, %s3124_s22 }
   0x6   : > { %253 = sbr.rel (%p250_p2) target bundleno = 5727 (0x165f), region = 44  ;;  %p292_p3 = scmp.lt.s32.totalorder (!%p250_p2), %s2576_s23, 15 }
   0x7   : > { %s2578_s25 = sshll.u32 (!%p250_p2), %s297_s24, 3  ;;  %p2584_p5 = scmp.ne.s32.totalorder (!%p250_p2), %s3124_s22, 0 }
   0x8   : > { %p299_p4 = scmp.lt.s32.totalorder (!%p250_p2), %s2578_s25, 15 }
   0xd   : > { %s3533_s23 = smov (!%p292_p3, %s2576_s23), 15  ;;  %s3535_s25 = smov (!%p299_p4, %s2578_s25), 15 }
   0xe   : > { %s2577_s26 = sshll.u32 %s3533_s23, 1  ;;  %s2579_s30 = sshll.u32 %s3535_s25, 1  ;;  %vm323_vm0 = vcmask (!%p2584_p5), 123904   ;;  %v3073_v0 = vmov (!%p2584_p5), 0.0  }
   0xf   : > { %s3135_s29 = scalar_lea.vmem %s3525_s0, %s2577_s26  ;;  %s3140_s9 = scalar_lea.vmem %s3526_s1, %s2579_s30  ;;  %324 = vst.msk [vmem:[#allocation2] sm:$0x3] (!%p2584_p5), %vm323_vm0, %v3073_v0  ;;  %325 = vst.msk [vmem:[#allocation3] sm:$0x3] (!%p2584_p5), %vm323_vm0, %v3073_v0 }
  0x10   : > { %s3145_s12 = scalar_lea.vmem %s3527_s2, %s2577_s26  ;;  %s3150_s15 = scalar_lea.vmem %s3528_s3, %s2579_s30  ;;  %326 = vst.msk [vmem:[#allocation4] sm:$0x3] (!%p2584_p5), %vm323_vm0, %v3073_v0  ;;  %327 = vst.msk [vmem:[#allocation5] sm:$0x3] (!%p2584_p5), %vm323_vm0, %v3073_v0 }
  0x11   : > { %322 = sbr.rel (%p2584_p5) target bundleno = 24 (0x18), region = 48 }
  0x18 PF: > { %v330_v1 = vld [vmem:[%s3529_s4] sm:$0xff]  ;;  %v331_v2 = vld [vmem:[%s3529_s4 + $0x8] sm:$0xff]  ;;  %v3074_v3 = vmov 0.0|0.0   ;;  %vm3075_vm1 = vmmov 0   ;;  %v3076_v5 = vmov 0.0   ;;  %vm332_vm2 = vcmask 130048  }
  0x19   : > { %2869 = vmatprep.subr.bf16.mxu0 %v3074_v3  ;;  %v3160_v4 = vpack.c.bf16 %v331_v2, %v330_v1  ;;  %2761 = vmatprep.mubr.msk.f32.mxu0 %vm3075_vm1, %v3076_v5  ;;  %v462_v6 = vld [vmem:[%s3530_s5] sm:$0xff]  ;;  %v463_v7 = vld [vmem:[%s3530_s5 + $0x8] sm:$0xff]  ;;  %s3077_s27 = smov 16   ;;  %v3078_v21 = vmov 0   ;;  %s3079_s28 = smov 96   ;;  %vm447_vm3 = vcmask 123904  }
  0x1a   : > { %2872 = vmatprep.subr.bf16.mxu1 %v3074_v3  ;;  %v3171_v8 = vpack.c.bf16 %v463_v7, %v462_v6  ;;  %2768 = vmatprep.mubr.msk.f32.mxu1 %vm3075_vm1, %v3076_v5  ;;  %v407_v9 = vld [vmem:[#allocation3] sm:$0x3]  ;;  %v329_v10 = vld [vmem:[#allocation2] sm:$0x3]  ;;  %v461_v11 = vld [vmem:[#allocation4] sm:$0x3] }
  0x1b   : > { %2871 = vmatpush3.bf16.msra.mxu0 %v3160_v4  ;;  %416 = vrot.lane.b32.xlu1 %v407_v9, %s3077_s27  ;;  %v538_v12 = vld [vmem:[#allocation5] sm:$0x3]  ;;  %v328_v13 = vld [vmem:[%s3135_s29] sm:$0x3]  ;;  %v2589_v14 = vld [vmem:[%s3140_s9 + $0xe] sm:$0x3] }
  0x1c   : > { %2874 = vmatpush3.bf16.msra.mxu1 %v3171_v8  ;;  %2875 = vmatprep.subr.bf16.mxu0 %v3074_v3  ;;  %v436_v35 = vld [vmem:[%s3145_s12] sm:$0x3]  ;;  %v2592_v37 = vld [vmem:[%s3150_s15 + $0xe] sm:$0x3]  ;;  %s3080_s30 = smov 32   ;;  %s3081_s7 = smov 80  }
  0x1d   : > { %2878 = vmatprep.subr.bf16.mxu1 %v3074_v3  ;;  %2935 = vset.pattern.permute.xlu0 %v3078_v21  ;;  %s3082_s8 = smov 112   ;;  %s2693_s10 = sshll.u32 %s3124_s22, 4  ;;  %v2597_v0 = vld [vmem:[%s3135_s29 + $0x2] sm:$0x3]  ;;  %v2604_v7 = vld [vmem:[%s3140_s9 + $0xc] sm:$0x3] }
  0x1e   : > { %2762 = vmatmul.mubr.msk.f32.vlgmr.msra.gmra.mrb[0].mxu0 %vm332_vm2, %v329_v10  ;;  %2936 = vset.pattern.permute.xlu1 %v3078_v21  ;;  %s3212_s14 = scalar_lea.vmem %s3531_s6, %s2693_s10  ;;  %vm594_vm4 = vcmask 255104  }
  0x1f   : > { %2769 = vmatmul.mubr.msk.f32.vlgmr.msra.gmra.mrb[0].mxu1 %vm332_vm2, %v461_v11  ;;  %547 = vrot.lane.b32.xlu1 %v538_v12, %s3077_s27 }
  0x20   : > { %2877 = vmatpush3.bf16.msra.mxu0 %v3160_v4  ;;  %2775 = vmatprep.mubr.msk.f32.mxu0 %vm3075_vm1, %v3076_v5 }
  0x21   : > { %2880 = vmatpush3.bf16.msra.mxu1 %v3171_v8  ;;  %2782 = vmatprep.mubr.msk.f32.mxu1 %vm3075_vm1, %v3076_v5 }
  0x22   : > { %2881 = vmatprep.subr.bf16.mxu0 %v3074_v3  ;;  %2884 = vmatprep.subr.bf16.mxu1 %v3074_v3 }
  0x8d   : > { %v417_v38 = vpop.permute.xlu1 %416 }
  0x91   : > { %v548_v40 = vpop.permute.xlu1 %547 }
  0xf1   : > { %v402_v15 = vpop.f32.mrb[0].mxu0 }
  0xf2   : > { %v406_v16 = vadd.f32 %v402_v15, %v328_v13  ;;  %v2763_v17 = vpop.f32.mrb[1].mxu0  ;;  %v533_v18 = vpop.f32.mrb[0].mxu1 }
  0xf3   : > { %v537_v19 = vadd.f32 %v2589_v14, %v533_v18  ;;  %v2770_v20 = vpop.f32.mrb[1].mxu1 }
  0xf4   : > { %2937 = vtanh.f32 %v406_v16  ;;  %v2586_v24 = vmul.f32 -1.442695, %v406_v16 }
  0xf5   : > { %2939 = vtanh.f32 %v537_v19  ;;  %v2591_v25 = vmul.f32 -1.442695, %v537_v19 }
  0xf6   : > { %2941 = vpow2.f32 %v2586_v24 }
  0xf7   : > { %2943 = vpow2.f32 %v2591_v25 }
  0xfe   : > { %v2938_v22 = vpop.eup %2937 }
  0xff   : > { %421 = vrot.lane.b32.xlu0 %v2938_v22, %s3079_s28  ;;  %v2940_v23 = vpop.eup %2939 }
 0x100   : > { %v2942_v26 = vpop.eup %2941 }
 0x101   : > { %v411_v27 = vadd.f32 1.0, %v2942_v26  ;;  %v2944_v28 = vpop.eup %2943 }
 0x102   : > { %v542_v29 = vadd.f32 1.0, %v2944_v28 }
 0x103   : > { %552 = vrot.lane.b32.xlu0 %v2940_v23, %s3079_s28  ;;  %2945 = vrcp.f32 %v411_v27  ;;  %v2600_v27 = vld [vmem:[%s3145_s12 + $0x2] sm:$0x3] }
 0x104   : > { %2947 = vrcp.f32 %v542_v29  ;;  %v2607_v29 = vld [vmem:[%s3150_s15 + $0xc] sm:$0x3] }
 0x10d   : > { %v2946_v30 = vpop.eup %2945 }
 0x10e   : > { %v2948_v33 = vpop.eup %2947  ;;  %v419_v39 = vmul.f32 %v2946_v30, %v417_v38 }
 0x10f   : > { %v550_v43 = vmul.f32 %v2948_v33, %v548_v40 }
 0x171   : > { %v422_v31 = vpop.permute.xlu0 %421 }
 0x172   : > { %v424_v32 = vmul.f32 %v2946_v30, %v422_v31 }
 0x174   : > { %426 = vrot.lane.b32.xlu0 %v424_v32, %s3077_s27 }
 0x175   : > { %v553_v34 = vpop.permute.xlu0 %552 }
 0x176   : > { %v555_v36 = vmul.f32 %v2948_v33, %v553_v34 }
 0x178   : > { %557 = vrot.lane.b32.xlu1 %v555_v36, %s3077_s27  ;;  %439 = vperm.xlu0 %2935, %v436_v35  }
 0x17c   : > { %571 = vperm.xlu1 %2936, %v2592_v37  }
 0x1e6   : > { %v427_v41 = vpop.permute.xlu0 %426 }
 0x1e7   : > { %v429_v42 = vadd.f32 %v427_v41, %v419_v39 }
 0x1e9   : > { %2949 = vtanh.f32 %v429_v42 }
 0x1ea   : > { %v558_v44 = vpop.permute.xlu1 %557 }
 0x1eb   : > { %v560_v45 = vadd.f32 %v558_v44, %v550_v43 }
 0x1ed   : > { %2951 = vtanh.f32 %v560_v45 }
 0x1f3   : > { %v2950_v46 = vpop.eup %2949 }
 0x1f4   : > { %432 = vrot.lane.b32.xlu1 %v2950_v46, %s3080_s30 }
 0x1f7   : > { %v2952_v47 = vpop.eup %2951  ;;  %v440_v49 = vpop.permute.xlu0 %439 }
 0x1f8   : > { %563 = vrot.lane.b32.xlu0 %v2952_v47, %s3080_s30  ;;  %v449_v55 = vmul.f32 %v440_v49, %v429_v42 }
 0x1fb   : > { %v572_v48 = vpop.permute.xlu1 %571 }
 0x1fc   : > { %v580_v57 = vmul.f32 %v572_v48, %v560_v45 }
 0x266   : > { %v433_v50 = vpop.permute.xlu1 %432 }
 0x267   : > { %v435_v51 = vmul.f32 %v2946_v30, %v433_v50 }
 0x269   : > { %v442_v52 = vmul.f32 %v440_v49, %v435_v51 }
 0x26a   : > { %v564_v53 = vpop.permute.xlu0 %563 }
 0x26b   : > { %v566_v54 = vmul.f32 %v2948_v33, %v564_v53  ;;  %444 = vrot.lane.b32.xlu1 %v442_v52, %s3081_s7 }
 0x26d   : > { %v3202_v56 = vmul.f32 %v572_v48, %v566_v54 }
 0x26f   : > { %576 = vrot.lane.b32.xlu0 %v3202_v56, %s3081_s7  ;;  %451 = vrot.lane.b32.xlu1 %v449_v55, %s3082_s8 }
 0x273   : > { %582 = vrot.lane.b32.xlu0 %v580_v57, %s3082_s8  ;;  %v2611_v57 = vld [vmem:[%s3135_s29 + $0x4] sm:$0x3] }
 0x2dd   : > { %v445_v58 = vpop.permute.xlu1 %444 }
 0x2de   : > { %448 = vst.msk [vmem:[#allocation2] sm:$0x3] %vm447_vm3, %v445_v58  ;;  %458 = vst.msk [vmem:[%s3212_s14] sm:$0x3] %vm447_vm3, %v445_v58 }
 0x2e1   : > { %v577_v59 = vpop.permute.xlu0 %576  ;;  %v452_v60 = vpop.permute.xlu1 %451 }
 0x2e2   : > { %579 = vst.msk [vmem:[#allocation4] sm:$0x3] %vm447_vm3, %v577_v59  ;;  %454 = vst.msk [vmem:[#allocation3] sm:$0x3] %vm447_vm3, %v452_v60 }
 0x2e5   : > { %v583_v61 = vpop.permute.xlu0 %582  ;;  %v598_v62 = vld [vmem:[#allocation2] sm:$0x3] }
 0x2e6   : > { %585 = vst.msk [vmem:[#allocation5] sm:$0x3] %vm447_vm3, %v583_v61  ;;  %2776 = vmatmul.mubr.msk.f32.vlgmr.msra.gmra.mrb[2].mxu0 %vm332_vm2, %v598_v62  ;;  %v2618_v61 = vld [vmem:[%s3140_s9 + $0xa] sm:$0x3] }
 0x2e7   : > { %2883 = vmatpush3.bf16.msra.mxu0 %v3160_v4  ;;  %2789 = vmatprep.mubr.msk.f32.mxu0 %vm3075_vm1, %v3076_v5 }
 0x2e8   : > { %2887 = vmatprep.subr.bf16.mxu0 %v3074_v3 }
 0x2e9   : > { %v729_v63 = vld [vmem:[#allocation4] sm:$0x3]  ;;  %v675_v14 = vld [vmem:[#allocation3] sm:$0x3] }
 0x2ea   : > { %2783 = vmatmul.mubr.msk.f32.vlgmr.msra.gmra.mrb[2].mxu1 %vm332_vm2, %v729_v63 }
 0x2eb   : > { %2886 = vmatpush3.bf16.msra.mxu1 %v3171_v8  ;;  %2796 = vmatprep.mubr.msk.f32.mxu1 %vm3075_vm1, %v3076_v5 }
 0x2ec   : > { %2890 = vmatprep.subr.bf16.mxu1 %v3074_v3 }
 0x2ed   : > { %v806_v15 = vld [vmem:[#allocation5] sm:$0x3] }
 0x3b9   : > { %v670_v1 = vpop.f32.mrb[2].mxu0 }
 0x3ba   : > { %v674_v2 = vadd.f32 %v2597_v0, %v670_v1  ;;  %v2777_v6 = vpop.f32.mrb[3].mxu0 }
 0x3bc   : > { %2953 = vtanh.f32 %v674_v2  ;;  %v2599_v16 = vmul.f32 -1.442695, %v674_v2 }
 0x3bd   : > { %v801_v9 = vpop.f32.mrb[2].mxu1 }
 0x3be   : > { %v805_v10 = vadd.f32 %v2604_v7, %v801_v9  ;;  %v2784_v11 = vpop.f32.mrb[3].mxu1 }
 0x3c0   : > { %2955 = vtanh.f32 %v805_v10  ;;  %v2606_v17 = vmul.f32 -1.442695, %v805_v10 }
 0x3c1   : > { %2957 = vpow2.f32 %v2599_v16 }
 0x3c2   : > { %2959 = vpow2.f32 %v2606_v17 }
 0x3c6   : > { %v2954_v12 = vpop.eup %2953 }
 0x3c7   : > { %689 = vrot.lane.b32.xlu1 %v2954_v12, %s3079_s28 }
 0x3ca   : > { %v2956_v13 = vpop.eup %2955 }
 0x3cb   : > { %820 = vrot.lane.b32.xlu0 %v2956_v13, %s3079_s28  ;;  %684 = vrot.lane.b32.xlu1 %v675_v14, %s3077_s27  ;;  %v2958_v18 = vpop.eup %2957 }
 0x3cc   : > { %v679_v19 = vadd.f32 1.0, %v2958_v18  ;;  %v2960_v20 = vpop.eup %2959 }
 0x3cd   : > { %v810_v21 = vadd.f32 1.0, %v2960_v20  ;;  %v2614_v20 = vld [vmem:[%s3145_s12 + $0x4] sm:$0x3] }
 0x3ce   : > { %2961 = vrcp.f32 %v679_v19 }
 0x3cf   : > { %815 = vrot.lane.b32.xlu0 %v806_v15, %s3077_s27  ;;  %2963 = vrcp.f32 %v810_v21 }
 0x3d8   : > { %v2962_v22 = vpop.eup %2961 }
 0x3d9   : > { %v2964_v25 = vpop.eup %2963 }
 0x439   : > { %v690_v23 = vpop.permute.xlu1 %689 }
 0x43a   : > { %v692_v24 = vmul.f32 %v2962_v22, %v690_v23 }
 0x43c   : > { %694 = vrot.lane.b32.xlu1 %v692_v24, %s3077_s27 }
 0x43d   : > { %v821_v26 = vpop.permute.xlu0 %820  ;;  %v685_v30 = vpop.permute.xlu1 %684 }
 0x43e   : > { %v823_v28 = vmul.f32 %v2964_v25, %v821_v26  ;;  %v687_v31 = vmul.f32 %v2962_v22, %v685_v30 }
 0x440   : > { %825 = vrot.lane.b32.xlu0 %v823_v28, %s3077_s27  ;;  %708 = vperm.xlu1 %2936, %v2600_v27  }
 0x441   : > { %v816_v32 = vpop.permute.xlu0 %815 }
 0x442   : > { %v818_v35 = vmul.f32 %v2964_v25, %v816_v32 }
 0x444   : > { %839 = vperm.xlu0 %2935, %v2607_v29  }
 0x4ae   : > { %v695_v33 = vpop.permute.xlu1 %694 }
 0x4af   : > { %v697_v34 = vadd.f32 %v695_v33, %v687_v31 }
 0x4b1   : > { %2965 = vtanh.f32 %v697_v34 }
 0x4b2   : > { %v826_v36 = vpop.permute.xlu0 %825 }
 0x4b3   : > { %v828_v37 = vadd.f32 %v826_v36, %v818_v35 }
 0x4b5   : > { %2967 = vtanh.f32 %v828_v37 }
 0x4bb   : > { %v2966_v38 = vpop.eup %2965 }
 0x4bc   : > { %700 = vrot.lane.b32.xlu1 %v2966_v38, %s3080_s30 }
 0x4bf   : > { %v2968_v39 = vpop.eup %2967  ;;  %v709_v40 = vpop.permute.xlu1 %708 }
 0x4c0   : > { %831 = vrot.lane.b32.xlu0 %v2968_v39, %s3080_s30  ;;  %v717_v47 = vmul.f32 %v709_v40, %v697_v34 }
 0x4c3   : > { %v840_v41 = vpop.permute.xlu0 %839 }
 0x4c4   : > { %v848_v49 = vmul.f32 %v840_v41, %v828_v37 }
 0x52e   : > { %v701_v42 = vpop.permute.xlu1 %700 }
 0x52f   : > { %v703_v43 = vmul.f32 %v2962_v22, %v701_v42  ;;  %v2621_v22 = vld [vmem:[%s3150_s15 + $0xa] sm:$0x3] }
 0x531   : > { %v711_v44 = vmul.f32 %v709_v40, %v703_v43 }
 0x532   : > { %v832_v45 = vpop.permute.xlu0 %831 }
 0x533   : > { %v834_v46 = vmul.f32 %v2964_v25, %v832_v45  ;;  %713 = vrot.lane.b32.xlu1 %v711_v44, %s3081_s7 }
 0x535   : > { %v3243_v48 = vmul.f32 %v840_v41, %v834_v46 }
 0x537   : > { %844 = vrot.lane.b32.xlu0 %v3243_v48, %s3081_s7  ;;  %719 = vrot.lane.b32.xlu1 %v717_v47, %s3082_s8 }
 0x53b   : > { %850 = vrot.lane.b32.xlu0 %v848_v49, %s3082_s8 }
 0x5a5   : > { %v3249_v50 = vpop.permute.xlu1 %713 }
 0x5a6   : > { %716 = vst.msk [vmem:[#allocation2] sm:$0x3] %vm447_vm3, %v3249_v50 }
 0x5a9   : > { %v845_v51 = vpop.permute.xlu0 %844  ;;  %v720_v52 = vpop.permute.xlu1 %719 }
 0x5aa   : > { %847 = vst.msk [vmem:[#allocation4] sm:$0x3] %vm447_vm3, %v845_v51  ;;  %722 = vst.msk [vmem:[#allocation3] sm:$0x3] %vm447_vm3, %v720_v52  ;;  %v2625_v51 = vld [vmem:[%s3135_s29 + $0x6] sm:$0x3] }
 0x5ad   : > { %v851_v53 = vpop.permute.xlu0 %850  ;;  %v863_v54 = vld [vmem:[#allocation2] sm:$0x3] }
 0x5ae   : > { %853 = vst.msk [vmem:[#allocation5] sm:$0x3] %vm447_vm3, %v851_v53  ;;  %2790 = vmatmul.mubr.msk.f32.vlgmr.msra.gmra.mrb[4].mxu0 %vm332_vm2, %v863_v54 }
 0x5af   : > { %2889 = vmatpush3.bf16.msra.mxu0 %v3160_v4  ;;  %2803 = vmatprep.mubr.msk.f32.mxu0 %vm3075_vm1, %v3076_v5 }
 0x5b0   : > { %2893 = vmatprep.subr.bf16.mxu0 %v3074_v3 }
 0x5b1   : > { %v994_v55 = vld [vmem:[#allocation4] sm:$0x3]  ;;  %v940_v6 = vld [vmem:[#allocation3] sm:$0x3] }
 0x5b2   : > { %2797 = vmatmul.mubr.msk.f32.vlgmr.msra.gmra.mrb[4].mxu1 %vm332_vm2, %v994_v55  ;;  %v2632_v55 = vld [vmem:[%s3140_s9 + $0x8] sm:$0x3] }
 0x5b3   : > { %2892 = vmatpush3.bf16.msra.mxu1 %v3171_v8  ;;  %2810 = vmatprep.mubr.msk.f32.mxu1 %vm3075_vm1, %v3076_v5 }
 0x5b4   : > { %2896 = vmatprep.subr.bf16.mxu1 %v3074_v3 }
 0x5b5   : > { %v1071_v7 = vld [vmem:[#allocation5] sm:$0x3] }
 0x681   : > { %v935_v58 = vpop.f32.mrb[4].mxu0 }
 0x682   : > { %v939_v59 = vadd.f32 %v2611_v57, %v935_v58  ;;  %v2791_v60 = vpop.f32.mrb[5].mxu0 }
 0x684   : > { %2969 = vtanh.f32 %v939_v59  ;;  %v2613_v9 = vmul.f32 -1.442695, %v939_v59 }
 0x685   : > { %v1066_v62 = vpop.f32.mrb[4].mxu1 }
 0x686   : > { %v1070_v63 = vadd.f32 %v2618_v61, %v1066_v62  ;;  %v2798_v0 = vpop.f32.mrb[5].mxu1 }
 0x688   : > { %2971 = vtanh.f32 %v1070_v63  ;;  %v2620_v10 = vmul.f32 -1.442695, %v1070_v63 }
 0x689   : > { %2973 = vpow2.f32 %v2613_v9 }
 0x68a   : > { %2975 = vpow2.f32 %v2620_v10 }
 0x68e   : > { %v2970_v1 = vpop.eup %2969 }
 0x68f   : > { %954 = vrot.lane.b32.xlu1 %v2970_v1, %s3079_s28 }
 0x692   : > { %v2972_v2 = vpop.eup %2971 }
 0x693   : > { %1085 = vrot.lane.b32.xlu0 %v2972_v2, %s3079_s28  ;;  %949 = vrot.lane.b32.xlu1 %v940_v6, %s3077_s27  ;;  %v2974_v11 = vpop.eup %2973 }
 0x694   : > { %v944_v12 = vadd.f32 1.0, %v2974_v11  ;;  %v2976_v13 = vpop.eup %2975 }
 0x695   : > { %v1075_v14 = vadd.f32 1.0, %v2976_v13 }
 0x696   : > { %2977 = vrcp.f32 %v944_v12 }
 0x697   : > { %1080 = vrot.lane.b32.xlu0 %v1071_v7, %s3077_s27  ;;  %2979 = vrcp.f32 %v1075_v14 }
 0x6a0   : > { %v2978_v15 = vpop.eup %2977 }
 0x6a1   : > { %v2980_v18 = vpop.eup %2979 }
 0x701   : > { %v955_v16 = vpop.permute.xlu1 %954 }
 0x702   : > { %v957_v17 = vmul.f32 %v2978_v15, %v955_v16 }
 0x704   : > { %959 = vrot.lane.b32.xlu1 %v957_v17, %s3077_s27  ;;  %v2635_v17 = vld [vmem:[%s3150_s15 + $0x8] sm:$0x3] }
 0x705   : > { %v1086_v19 = vpop.permute.xlu0 %1085  ;;  %v950_v23 = vpop.permute.xlu1 %949 }
 0x706   : > { %v1088_v21 = vmul.f32 %v2980_v18, %v1086_v19  ;;  %v952_v24 = vmul.f32 %v2978_v15, %v950_v23 }
 0x708   : > { %1090 = vrot.lane.b32.xlu0 %v1088_v21, %s3077_s27  ;;  %973 = vperm.xlu1 %2936, %v2614_v20  }
 0x709   : > { %v1081_v25 = vpop.permute.xlu0 %1080 }
 0x70a   : > { %v1083_v28 = vmul.f32 %v2980_v18, %v1081_v25 }
 0x70c   : > { %1104 = vperm.xlu0 %2935, %v2621_v22  }
 0x776   : > { %v960_v26 = vpop.permute.xlu1 %959 }
 0x777   : > { %v962_v27 = vadd.f32 %v960_v26, %v952_v24 }
 0x779   : > { %2981 = vtanh.f32 %v962_v27 }
 0x77a   : > { %v1091_v29 = vpop.permute.xlu0 %1090 }
 0x77b   : > { %v1093_v30 = vadd.f32 %v1091_v29, %v1083_v28 }
 0x77d   : > { %2983 = vtanh.f32 %v1093_v30 }
 0x783   : > { %v2982_v31 = vpop.eup %2981 }
 0x784   : > { %965 = vrot.lane.b32.xlu1 %v2982_v31, %s3080_s30 }
 0x787   : > { %v2984_v32 = vpop.eup %2983  ;;  %v974_v33 = vpop.permute.xlu1 %973 }
 0x788   : > { %1096 = vrot.lane.b32.xlu0 %v2984_v32, %s3080_s30  ;;  %v982_v40 = vmul.f32 %v974_v33, %v962_v27 }
 0x78b   : > { %v1105_v34 = vpop.permute.xlu0 %1104 }
 0x78c   : > { %v1113_v42 = vmul.f32 %v1105_v34, %v1093_v30 }
 0x7f6   : > { %v966_v35 = vpop.permute.xlu1 %965 }
 0x7f7   : > { %v968_v36 = vmul.f32 %v2978_v15, %v966_v35  ;;  %v2628_v15 = vld [vmem:[%s3145_s12 + $0x6] sm:$0x3] }
 0x7f9   : > { %v976_v37 = vmul.f32 %v974_v33, %v968_v36 }
 0x7fa   : > { %v1097_v38 = vpop.permute.xlu0 %1096 }
 0x7fb   : > { %v1099_v39 = vmul.f32 %v2980_v18, %v1097_v38  ;;  %978 = vrot.lane.b32.xlu1 %v976_v37, %s3081_s7 }
 0x7fd   : > { %v3279_v41 = vmul.f32 %v1105_v34, %v1099_v39 }
 0x7ff   : > { %1109 = vrot.lane.b32.xlu0 %v3279_v41, %s3081_s7  ;;  %984 = vrot.lane.b32.xlu1 %v982_v40, %s3082_s8 }
 0x803   : > { %1115 = vrot.lane.b32.xlu0 %v1113_v42, %s3082_s8 }
 0x86d   : > { %v3285_v43 = vpop.permute.xlu1 %978 }
 0x86e   : > { %981 = vst.msk [vmem:[#allocation2] sm:$0x3] %vm447_vm3, %v3285_v43 }
 0x871   : > { %v1110_v44 = vpop.permute.xlu0 %1109  ;;  %v985_v45 = vpop.permute.xlu1 %984 }
 0x872   : > { %1112 = vst.msk [vmem:[#allocation4] sm:$0x3] %vm447_vm3, %v1110_v44  ;;  %987 = vst.msk [vmem:[#allocation3] sm:$0x3] %vm447_vm3, %v985_v45 }
 0x875   : > { %v1116_v46 = vpop.permute.xlu0 %1115  ;;  %v1128_v47 = vld [vmem:[#allocation2] sm:$0x3] }
 0x876   : > { %1118 = vst.msk [vmem:[#allocation5] sm:$0x3] %vm447_vm3, %v1116_v46  ;;  %2804 = vmatmul.mubr.msk.f32.vlgmr.msra.gmra.mrb[6].mxu0 %vm332_vm2, %v1128_v47  ;;  %v2639_v46 = vld [vmem:[%s3135_s29 + $0x8] sm:$0x3] }
 0x877   : > { %2895 = vmatpush3.bf16.msra.mxu0 %v3160_v4  ;;  %2817 = vmatprep.mubr.msk.f32.mxu0 %vm3075_vm1, %v3076_v5 }
 0x878   : > { %2899 = vmatprep.subr.bf16.mxu0 %v3074_v3 }
 0x879   : > { %v1259_v49 = vld [vmem:[#allocation4] sm:$0x3]  ;;  %v1205_v62 = vld [vmem:[#allocation3] sm:$0x3] }
 0x87a   : > { %2811 = vmatmul.mubr.msk.f32.vlgmr.msra.gmra.mrb[6].mxu1 %vm332_vm2, %v1259_v49 }
 0x87b   : > { %2898 = vmatpush3.bf16.msra.mxu1 %v3171_v8  ;;  %2824 = vmatprep.mubr.msk.f32.mxu1 %vm3075_vm1, %v3076_v5 }
 0x87c   : > { %2902 = vmatprep.subr.bf16.mxu1 %v3074_v3 }
 0x87d   : > { %v1336_v63 = vld [vmem:[#allocation5] sm:$0x3] }
 0x949   : > { %v1200_v52 = vpop.f32.mrb[6].mxu0 }
 0x94a   : > { %v1204_v53 = vadd.f32 %v2625_v51, %v1200_v52  ;;  %v2805_v54 = vpop.f32.mrb[7].mxu0 }
 0x94c   : > { %2985 = vtanh.f32 %v1204_v53  ;;  %v2627_v0 = vmul.f32 -1.442695, %v1204_v53 }
 0x94d   : > { %v1331_v57 = vpop.f32.mrb[6].mxu1 }
 0x94e   : > { %v1335_v58 = vadd.f32 %v2632_v55, %v1331_v57  ;;  %v2812_v59 = vpop.f32.mrb[7].mxu1 }
 0x950   : > { %2987 = vtanh.f32 %v1335_v58  ;;  %v2634_v1 = vmul.f32 -1.442695, %v1335_v58 }
 0x951   : > { %2989 = vpow2.f32 %v2627_v0 }
 0x952   : > { %2991 = vpow2.f32 %v2634_v1 }
 0x956   : > { %v2986_v60 = vpop.eup %2985 }
 0x957   : > { %1219 = vrot.lane.b32.xlu1 %v2986_v60, %s3079_s28 }
 0x95a   : > { %v2988_v61 = vpop.eup %2987 }
 0x95b   : > { %1350 = vrot.lane.b32.xlu0 %v2988_v61, %s3079_s28  ;;  %1214 = vrot.lane.b32.xlu1 %v1205_v62, %s3077_s27  ;;  %v2990_v2 = vpop.eup %2989 }
 0x95c   : > { %v1209_v6 = vadd.f32 1.0, %v2990_v2  ;;  %v2992_v7 = vpop.eup %2991 }
 0x95d   : > { %v1340_v9 = vadd.f32 1.0, %v2992_v7 }
 0x95e   : > { %2993 = vrcp.f32 %v1209_v6 }
 0x95f   : > { %1345 = vrot.lane.b32.xlu0 %v1336_v63, %s3077_s27  ;;  %2995 = vrcp.f32 %v1340_v9 }
 0x968   : > { %v2994_v10 = vpop.eup %2993 }
 0x969   : > { %v2996_v13 = vpop.eup %2995 }
 0x9c9   : > { %v1220_v11 = vpop.permute.xlu1 %1219 }
 0x9ca   : > { %v1222_v12 = vmul.f32 %v2994_v10, %v1220_v11 }
 0x9cc   : > { %1224 = vrot.lane.b32.xlu1 %v1222_v12, %s3077_s27  ;;  %v2649_v12 = vld [vmem:[%s3150_s15 + $0x6] sm:$0x3] }
 0x9cd   : > { %v1351_v14 = vpop.permute.xlu0 %1350  ;;  %v1215_v18 = vpop.permute.xlu1 %1214 }
 0x9ce   : > { %v1353_v16 = vmul.f32 %v2996_v13, %v1351_v14  ;;  %v1217_v19 = vmul.f32 %v2994_v10, %v1215_v18 }
 0x9d0   : > { %1355 = vrot.lane.b32.xlu0 %v1353_v16, %s3077_s27  ;;  %1238 = vperm.xlu1 %2936, %v2628_v15  }
 0x9d1   : > { %v1346_v20 = vpop.permute.xlu0 %1345 }
 0x9d2   : > { %v1348_v23 = vmul.f32 %v2996_v13, %v1346_v20 }
 0x9d4   : > { %1369 = vperm.xlu0 %2935, %v2635_v17  }
 0xa3e   : > { %v1225_v21 = vpop.permute.xlu1 %1224 }
 0xa3f   : > { %v1227_v22 = vadd.f32 %v1225_v21, %v1217_v19 }
 0xa41   : > { %2997 = vtanh.f32 %v1227_v22 }
 0xa42   : > { %v1356_v24 = vpop.permute.xlu0 %1355 }
 0xa43   : > { %v1358_v25 = vadd.f32 %v1356_v24, %v1348_v23 }
 0xa45   : > { %2999 = vtanh.f32 %v1358_v25 }
 0xa4b   : > { %v2998_v26 = vpop.eup %2997 }
 0xa4c   : > { %1230 = vrot.lane.b32.xlu1 %v2998_v26, %s3080_s30 }
 0xa4f   : > { %v3000_v27 = vpop.eup %2999  ;;  %v1239_v28 = vpop.permute.xlu1 %1238 }
 0xa50   : > { %1361 = vrot.lane.b32.xlu0 %v3000_v27, %s3080_s30  ;;  %v1247_v35 = vmul.f32 %v1239_v28, %v1227_v22 }
 0xa53   : > { %v1370_v29 = vpop.permute.xlu0 %1369 }
 0xa54   : > { %v1378_v37 = vmul.f32 %v1370_v29, %v1358_v25 }
 0xabe   : > { %v1231_v30 = vpop.permute.xlu1 %1230 }
 0xabf   : > { %v1233_v31 = vmul.f32 %v2994_v10, %v1231_v30  ;;  %v2642_v10 = vld [vmem:[%s3145_s12 + $0x8] sm:$0x3] }
 0xac1   : > { %v1241_v32 = vmul.f32 %v1239_v28, %v1233_v31 }
 0xac2   : > { %v1362_v33 = vpop.permute.xlu0 %1361 }
 0xac3   : > { %v1364_v34 = vmul.f32 %v2996_v13, %v1362_v33  ;;  %1243 = vrot.lane.b32.xlu1 %v1241_v32, %s3081_s7 }
 0xac5   : > { %v3315_v36 = vmul.f32 %v1370_v29, %v1364_v34 }
 0xac7   : > { %1374 = vrot.lane.b32.xlu0 %v3315_v36, %s3081_s7  ;;  %1249 = vrot.lane.b32.xlu1 %v1247_v35, %s3082_s8 }
 0xacb   : > { %1380 = vrot.lane.b32.xlu0 %v1378_v37, %s3082_s8 }
 0xb35   : > { %v3321_v38 = vpop.permute.xlu1 %1243 }
 0xb36   : > { %1246 = vst.msk [vmem:[#allocation2] sm:$0x3] %vm447_vm3, %v3321_v38 }
 0xb39   : > { %v1375_v39 = vpop.permute.xlu0 %1374  ;;  %v1250_v40 = vpop.permute.xlu1 %1249 }
 0xb3a   : > { %1377 = vst.msk [vmem:[#allocation4] sm:$0x3] %vm447_vm3, %v1375_v39  ;;  %1252 = vst.msk [vmem:[#allocation3] sm:$0x3] %vm447_vm3, %v1250_v40 }
 0xb3d   : > { %v1381_v42 = vpop.permute.xlu0 %1380  ;;  %v1393_v44 = vld [vmem:[#allocation2] sm:$0x3] }
 0xb3e   : > { %1383 = vst.msk [vmem:[#allocation5] sm:$0x3] %vm447_vm3, %v1381_v42  ;;  %2818 = vmatmul.mubr.msk.f32.vlgmr.msra.gmra.mrb[8].mxu0 %vm332_vm2, %v1393_v44  ;;  %v2653_v42 = vld [vmem:[%s3135_s29 + $0xa] sm:$0x3] }
 0xb3f   : > { %2901 = vmatpush3.bf16.msra.mxu0 %v3160_v4  ;;  %2831 = vmatprep.mubr.msk.f32.mxu0 %vm3075_vm1, %v3076_v5  ;;  %v2646_v4 = vld [vmem:[%s3140_s9 + $0x6] sm:$0x3] }
 0xb40   : > { %2905 = vmatprep.subr.bf16.mxu0 %v3074_v3 }
 0xb41   : > { %v1524_v45 = vld [vmem:[#allocation4] sm:$0x3] }
 0xb42   : > { %2825 = vmatmul.mubr.msk.f32.vlgmr.msra.gmra.mrb[8].mxu1 %vm332_vm2, %v1524_v45 }
 0xb43   : > { %2904 = vmatpush3.bf16.msra.mxu1 %v3171_v8  ;;  %2838 = vmatprep.mubr.msk.f32.mxu1 %vm3075_vm1, %v3076_v5  ;;  %v1470_v8 = vld [vmem:[#allocation3] sm:$0x3] }
 0xb44   : > { %2908 = vmatprep.subr.bf16.mxu1 %v3074_v3 }
 0xb45   : > { %v1601_v58 = vld [vmem:[#allocation5] sm:$0x3] }
 0xc11   : > { %v1465_v47 = vpop.f32.mrb[8].mxu0 }
 0xc12   : > { %v1469_v49 = vadd.f32 %v2639_v46, %v1465_v47  ;;  %v2819_v51 = vpop.f32.mrb[9].mxu0  ;;  %v2660_v47 = vld [vmem:[%s3140_s9 + $0x4] sm:$0x3] }
 0xc14   : > { %3001 = vtanh.f32 %v1469_v49  ;;  %v2641_v59 = vmul.f32 -1.442695, %v1469_v49 }
 0xc15   : > { %v1596_v52 = vpop.f32.mrb[8].mxu1 }
 0xc16   : > { %v1600_v53 = vadd.f32 %v2646_v4, %v1596_v52  ;;  %v2826_v54 = vpop.f32.mrb[9].mxu1 }
 0xc18   : > { %3003 = vtanh.f32 %v1600_v53  ;;  %v2648_v60 = vmul.f32 -1.442695, %v1600_v53 }
 0xc19   : > { %3005 = vpow2.f32 %v2641_v59 }
 0xc1a   : > { %3007 = vpow2.f32 %v2648_v60 }
 0xc1e   : > { %v3002_v55 = vpop.eup %3001 }
 0xc1f   : > { %1484 = vrot.lane.b32.xlu1 %v3002_v55, %s3079_s28 }
 0xc22   : > { %v3004_v57 = vpop.eup %3003 }
 0xc23   : > { %1615 = vrot.lane.b32.xlu0 %v3004_v57, %s3079_s28  ;;  %1479 = vrot.lane.b32.xlu1 %v1470_v8, %s3077_s27  ;;  %v3006_v61 = vpop.eup %3005 }
 0xc24   : > { %v1474_v62 = vadd.f32 1.0, %v3006_v61  ;;  %v3008_v63 = vpop.eup %3007 }
 0xc25   : > { %v1605_v0 = vadd.f32 1.0, %v3008_v63 }
 0xc26   : > { %3009 = vrcp.f32 %v1474_v62 }
 0xc27   : > { %1610 = vrot.lane.b32.xlu0 %v1601_v58, %s3077_s27  ;;  %3011 = vrcp.f32 %v1605_v0 }
 0xc30   : > { %v3010_v1 = vpop.eup %3009 }
 0xc31   : > { %v3012_v7 = vpop.eup %3011 }
 0xc91   : > { %v1485_v2 = vpop.permute.xlu1 %1484 }
 0xc92   : > { %v1487_v6 = vmul.f32 %v3010_v1, %v1485_v2 }
 0xc94   : > { %1489 = vrot.lane.b32.xlu1 %v1487_v6, %s3077_s27  ;;  %v2656_v6 = vld [vmem:[%s3145_s12 + $0xa] sm:$0x3] }
 0xc95   : > { %v1616_v9 = vpop.permute.xlu0 %1615  ;;  %v1480_v13 = vpop.permute.xlu1 %1479 }
 0xc96   : > { %v1618_v11 = vmul.f32 %v3012_v7, %v1616_v9  ;;  %v1482_v14 = vmul.f32 %v3010_v1, %v1480_v13  ;;  %v2663_v9 = vld [vmem:[%s3150_s15 + $0x4] sm:$0x3] }
 0xc98   : > { %1620 = vrot.lane.b32.xlu0 %v1618_v11, %s3077_s27  ;;  %1503 = vperm.xlu1 %2936, %v2642_v10  }
 0xc99   : > { %v1611_v15 = vpop.permute.xlu0 %1610 }
 0xc9a   : > { %v1613_v18 = vmul.f32 %v3012_v7, %v1611_v15 }
 0xc9c   : > { %1634 = vperm.xlu0 %2935, %v2649_v12  }
 0xd06   : > { %v1490_v16 = vpop.permute.xlu1 %1489 }
 0xd07   : > { %v1492_v17 = vadd.f32 %v1490_v16, %v1482_v14 }
 0xd09   : > { %3013 = vtanh.f32 %v1492_v17 }
 0xd0a   : > { %v1621_v19 = vpop.permute.xlu0 %1620 }
 0xd0b   : > { %v1623_v20 = vadd.f32 %v1621_v19, %v1613_v18 }
 0xd0d   : > { %3015 = vtanh.f32 %v1623_v20 }
 0xd13   : > { %v3014_v21 = vpop.eup %3013 }
 0xd14   : > { %1495 = vrot.lane.b32.xlu1 %v3014_v21, %s3080_s30  ;;  %v1925_v21 = vld [vmem:[%s3529_s4 + $0x8] sm:$0xff] }
 0xd17   : > { %v3016_v22 = vpop.eup %3015  ;;  %v1504_v23 = vpop.permute.xlu1 %1503 }
 0xd18   : > { %1626 = vrot.lane.b32.xlu0 %v3016_v22, %s3080_s30  ;;  %v1512_v30 = vmul.f32 %v1504_v23, %v1492_v17 }
 0xd1b   : > { %v1635_v24 = vpop.permute.xlu0 %1634 }
 0xd1c   : > { %v1643_v32 = vmul.f32 %v1635_v24, %v1623_v20  ;;  %v1924_v20 = vld [vmem:[%s3529_s4] sm:$0xff] }
 0xd1d   : > { %v2906_v22 = vpack.c.bf16 %v1925_v21, %v1924_v20 }
 0xd86   : > { %v1496_v25 = vpop.permute.xlu1 %1495 }
 0xd87   : > { %v1498_v26 = vmul.f32 %v3010_v1, %v1496_v25  ;;  %v2056_v25 = vld [vmem:[%s3530_s5 + $0x8] sm:$0xff] }
 0xd89   : > { %v1506_v27 = vmul.f32 %v1504_v23, %v1498_v26 }
 0xd8a   : > { %v1627_v28 = vpop.permute.xlu0 %1626 }
 0xd8b   : > { %v1629_v29 = vmul.f32 %v3012_v7, %v1627_v28  ;;  %1508 = vrot.lane.b32.xlu1 %v1506_v27, %s3081_s7 }
 0xd8d   : > { %v3351_v31 = vmul.f32 %v1635_v24, %v1629_v29  ;;  %v2055_v24 = vld [vmem:[%s3530_s5] sm:$0xff] }
 0xd8e   : > { %v2909_v26 = vpack.c.bf16 %v2056_v25, %v2055_v24 }
 0xd8f   : > { %1639 = vrot.lane.b32.xlu0 %v3351_v31, %s3081_s7  ;;  %1514 = vrot.lane.b32.xlu1 %v1512_v30, %s3082_s8 }
 0xd93   : > { %1645 = vrot.lane.b32.xlu0 %v1643_v32, %s3082_s8 }
 0xdfd   : > { %v3357_v33 = vpop.permute.xlu1 %1508 }
 0xdfe   : > { %1511 = vst.msk [vmem:[#allocation2] sm:$0x3] %vm447_vm3, %v3357_v33 }
 0xe01   : > { %v1640_v34 = vpop.permute.xlu0 %1639  ;;  %v1515_v35 = vpop.permute.xlu1 %1514 }
 0xe02   : > { %1642 = vst.msk [vmem:[#allocation4] sm:$0x3] %vm447_vm3, %v1640_v34  ;;  %1517 = vst.msk [vmem:[#allocation3] sm:$0x3] %vm447_vm3, %v1515_v35 }
 0xe05   : > { %v1646_v37 = vpop.permute.xlu0 %1645  ;;  %v1658_v39 = vld [vmem:[#allocation2] sm:$0x3] }
 0xe06   : > { %1648 = vst.msk [vmem:[#allocation5] sm:$0x3] %vm447_vm3, %v1646_v37  ;;  %2832 = vmatmul.mubr.msk.f32.vlgmr.msra.gmra.mrb[10].mxu0 %vm332_vm2, %v1658_v39 }
 0xe07   : > { %2845 = vmatprep.mubr.msk.f32.mxu0 %vm3075_vm1, %v3076_v5  ;;  %2907 = vmatpush3.bf16.msra.mxu0 %v2906_v22 }
 0xe08   : > { %2911 = vmatprep.subr.bf16.mxu0 %v3074_v3 }
 0xe09   : > { %v1789_v40 = vld [vmem:[#allocation4] sm:$0x3]  ;;  %v1735_v54 = vld [vmem:[#allocation3] sm:$0x3] }
 0xe0a   : > { %2839 = vmatmul.mubr.msk.f32.vlgmr.msra.gmra.mrb[10].mxu1 %vm332_vm2, %v1789_v40 }
 0xe0b   : > { %2852 = vmatprep.mubr.msk.f32.mxu1 %vm3075_vm1, %v3076_v5  ;;  %2910 = vmatpush3.bf16.msra.mxu1 %v2909_v26 }
 0xe0c   : > { %2914 = vmatprep.subr.bf16.mxu1 %v3074_v3 }
 0xe0d   : > { %v1866_v55 = vld [vmem:[#allocation5] sm:$0x3] }
 0xed9   : > { %v1730_v44 = vpop.f32.mrb[10].mxu0 }
 0xeda   : > { %v1734_v45 = vadd.f32 %v2653_v42, %v1730_v44  ;;  %v2833_v46 = vpop.f32.mrb[11].mxu0 }
 0xedc   : > { %3017 = vtanh.f32 %v1734_v45  ;;  %v2655_v57 = vmul.f32 -1.442695, %v1734_v45 }
 0xedd   : > { %v1861_v49 = vpop.f32.mrb[10].mxu1 }
 0xede   : > { %v1865_v51 = vadd.f32 %v2660_v47, %v1861_v49  ;;  %v2840_v4 = vpop.f32.mrb[11].mxu1  ;;  %v2667_v47 = vld [vmem:[%s3135_s29 + $0xc] sm:$0x3] }
 0xee0   : > { %3019 = vtanh.f32 %v1865_v51  ;;  %v2662_v8 = vmul.f32 -1.442695, %v1865_v51 }
 0xee1   : > { %3021 = vpow2.f32 %v2655_v57 }
 0xee2   : > { %3023 = vpow2.f32 %v2662_v8 }
 0xee6   : > { %v3018_v52 = vpop.eup %3017 }
 0xee7   : > { %1749 = vrot.lane.b32.xlu1 %v3018_v52, %s3079_s28  ;;  %v2674_v52 = vld [vmem:[%s3140_s9 + $0x2] sm:$0x3] }
 0xeea   : > { %v3020_v53 = vpop.eup %3019 }
 0xeeb   : > { %1880 = vrot.lane.b32.xlu0 %v3020_v53, %s3079_s28  ;;  %1744 = vrot.lane.b32.xlu1 %v1735_v54, %s3077_s27  ;;  %v3022_v58 = vpop.eup %3021 }
 0xeec   : > { %v1739_v59 = vadd.f32 1.0, %v3022_v58  ;;  %v3024_v60 = vpop.eup %3023 }
 0xeed   : > { %v1870_v61 = vadd.f32 1.0, %v3024_v60 }
 0xeee   : > { %3025 = vrcp.f32 %v1739_v59 }
 0xeef   : > { %1875 = vrot.lane.b32.xlu0 %v1866_v55, %s3077_s27  ;;  %3027 = vrcp.f32 %v1870_v61 }
 0xef8   : > { %v3026_v62 = vpop.eup %3025 }
 0xef9   : > { %v3028_v1 = vpop.eup %3027 }
 0xf59   : > { %v1750_v63 = vpop.permute.xlu1 %1749 }
 0xf5a   : > { %v1752_v0 = vmul.f32 %v3026_v62, %v1750_v63 }
 0xf5c   : > { %1754 = vrot.lane.b32.xlu1 %v1752_v0, %s3077_s27 }
 0xf5d   : > { %v1881_v2 = vpop.permute.xlu0 %1880  ;;  %v1745_v10 = vpop.permute.xlu1 %1744 }
 0xf5e   : > { %v1883_v7 = vmul.f32 %v3028_v1, %v1881_v2  ;;  %v1747_v11 = vmul.f32 %v3026_v62, %v1745_v10  ;;  %v2670_v10 = vld [vmem:[%s3145_s12 + $0xc] sm:$0x3] }
 0xf60   : > { %1885 = vrot.lane.b32.xlu0 %v1883_v7, %s3077_s27  ;;  %1768 = vperm.xlu1 %2936, %v2656_v6  }
 0xf61   : > { %v1876_v12 = vpop.permute.xlu0 %1875 }
 0xf62   : > { %v1878_v15 = vmul.f32 %v3028_v1, %v1876_v12  ;;  %v2677_v12 = vld [vmem:[%s3150_s15 + $0x2] sm:$0x3] }
 0xf64   : > { %1899 = vperm.xlu0 %2935, %v2663_v9  }
 0xfce   : > { %v1755_v13 = vpop.permute.xlu1 %1754 }
 0xfcf   : > { %v1757_v14 = vadd.f32 %v1755_v13, %v1747_v11 }
 0xfd1   : > { %3029 = vtanh.f32 %v1757_v14 }
 0xfd2   : > { %v1886_v16 = vpop.permute.xlu0 %1885 }
 0xfd3   : > { %v1888_v17 = vadd.f32 %v1886_v16, %v1878_v15 }
 0xfd5   : > { %3031 = vtanh.f32 %v1888_v17 }
 0xfdb   : > { %v3030_v18 = vpop.eup %3029 }
 0xfdc   : > { %1760 = vrot.lane.b32.xlu1 %v3030_v18, %s3080_s30 }
 0xfdf   : > { %v3032_v19 = vpop.eup %3031  ;;  %v1769_v23 = vpop.permute.xlu1 %1768 }
 0xfe0   : > { %1891 = vrot.lane.b32.xlu0 %v3032_v19, %s3080_s30  ;;  %v1777_v35 = vmul.f32 %v1769_v23, %v1757_v14 }
 0xfe3   : > { %v1900_v27 = vpop.permute.xlu0 %1899 }
 0xfe4   : > { %v1908_v39 = vmul.f32 %v1900_v27, %v1888_v17 }
0x104e   : > { %v1761_v28 = vpop.permute.xlu1 %1760 }
0x104f   : > { %v1763_v29 = vmul.f32 %v3026_v62, %v1761_v28 }
0x1051   : > { %v1771_v30 = vmul.f32 %v1769_v23, %v1763_v29 }
0x1052   : > { %v1892_v32 = vpop.permute.xlu0 %1891 }
0x1053   : > { %v1894_v34 = vmul.f32 %v3028_v1, %v1892_v32  ;;  %1773 = vrot.lane.b32.xlu1 %v1771_v30, %s3081_s7 }
0x1055   : > { %v3397_v37 = vmul.f32 %v1900_v27, %v1894_v34 }
0x1057   : > { %1904 = vrot.lane.b32.xlu0 %v3397_v37, %s3081_s7  ;;  %1779 = vrot.lane.b32.xlu1 %v1777_v35, %s3082_s8 }
0x105b   : > { %1910 = vrot.lane.b32.xlu0 %v1908_v39, %s3082_s8 }
0x10c5   : > { %v3403_v40 = vpop.permute.xlu1 %1773 }
0x10c6   : > { %1776 = vst.msk [vmem:[#allocation2] sm:$0x3] %vm447_vm3, %v3403_v40 }
0x10c9   : > { %v1905_v3 = vpop.permute.xlu0 %1904  ;;  %v1780_v42 = vpop.permute.xlu1 %1779 }
0x10ca   : > { %1907 = vst.msk [vmem:[#allocation4] sm:$0x3] %vm447_vm3, %v1905_v3  ;;  %1782 = vst.msk [vmem:[#allocation3] sm:$0x3] %vm447_vm3, %v1780_v42 }
0x10cd   : > { %v1911_v44 = vpop.permute.xlu0 %1910  ;;  %v1923_v45 = vld [vmem:[#allocation2] sm:$0x3] }
0x10ce   : > { %1913 = vst.msk [vmem:[#allocation5] sm:$0x3] %vm447_vm3, %v1911_v44  ;;  %2846 = vmatmul.mubr.msk.f32.vlgmr.msra.gmra.mrb[12].mxu0 %vm332_vm2, %v1923_v45 }
0x10cf   : > { %2913 = vmatpush3.bf16.msra.mxu0 %v2906_v22  ;;  %2859 = vmatprep.mubr.msk.f32.mxu0 %vm3075_vm1, %v3076_v5 }
0x10d1   : > { %v2054_v46 = vld [vmem:[#allocation4] sm:$0x3]  ;;  %v2000_v58 = vld [vmem:[#allocation3] sm:$0x3] }
0x10d2   : > { %2853 = vmatmul.mubr.msk.f32.vlgmr.msra.gmra.mrb[12].mxu1 %vm332_vm2, %v2054_v46  ;;  %v2681_v46 = vld [vmem:[%s3135_s29 + $0xe] sm:$0x3]  ;;  %s2694_s29 = sshll.u32 %s297_s24, 4 }
0x10d3   : > { %2916 = vmatpush3.bf16.msra.mxu1 %v2909_v26  ;;  %2866 = vmatprep.mubr.msk.f32.mxu1 %vm3075_vm1, %v3076_v5 }
0x10d5   : > { %v2131_v5 = vld [vmem:[#allocation5] sm:$0x3] }
0x11a1   : > { %v1995_v49 = vpop.f32.mrb[12].mxu0 }
0x11a2   : > { %v1999_v51 = vadd.f32 %v2667_v47, %v1995_v49  ;;  %v2847_v4 = vpop.f32.mrb[13].mxu0 }
0x11a3   : > { %v2317_v4 = vld [vmem:[%s3140_s9] sm:$0x3] }
0x11a4   : > { %3033 = vtanh.f32 %v1999_v51  ;;  %v2669_v59 = vmul.f32 -1.442695, %v1999_v51 }
0x11a5   : > { %v2126_v53 = vpop.f32.mrb[12].mxu1 }
0x11a6   : > { %v2130_v54 = vadd.f32 %v2674_v52, %v2126_v53  ;;  %v2854_v55 = vpop.f32.mrb[13].mxu1 }
0x11a8   : > { %3035 = vtanh.f32 %v2130_v54  ;;  %v2676_v60 = vmul.f32 -1.442695, %v2130_v54 }
0x11a9   : > { %3037 = vpow2.f32 %v2669_v59 }
0x11aa   : > { %3039 = vpow2.f32 %v2676_v60 }
0x11ae   : > { %v3034_v57 = vpop.eup %3033 }
0x11af   : > { %2014 = vrot.lane.b32.xlu1 %v3034_v57, %s3079_s28 }
0x11b2   : > { %v3036_v8 = vpop.eup %3035 }
0x11b3   : > { %2145 = vrot.lane.b32.xlu0 %v3036_v8, %s3079_s28  ;;  %2009 = vrot.lane.b32.xlu1 %v2000_v58, %s3077_s27  ;;  %v3038_v61 = vpop.eup %3037 }
0x11b4   : > { %v2004_v62 = vadd.f32 1.0, %v3038_v61  ;;  %v3040_v63 = vpop.eup %3039 }
0x11b5   : > { %v2135_v0 = vadd.f32 1.0, %v3040_v63 }
0x11b6   : > { %3041 = vrcp.f32 %v2004_v62 }
0x11b7   : > { %2140 = vrot.lane.b32.xlu0 %v2131_v5, %s3077_s27  ;;  %3043 = vrcp.f32 %v2135_v0 }
0x11c0   : > { %v3042_v1 = vpop.eup %3041 }
0x11c1   : > { %v3044_v7 = vpop.eup %3043 }
0x1221   : > { %v2015_v2 = vpop.permute.xlu1 %2014 }
0x1222   : > { %v2017_v6 = vmul.f32 %v3042_v1, %v2015_v2 }
0x1224   : > { %2019 = vrot.lane.b32.xlu1 %v2017_v6, %s3077_s27 }
0x1225   : > { %v2146_v9 = vpop.permute.xlu0 %2145  ;;  %v2010_v13 = vpop.permute.xlu1 %2009 }
0x1226   : > { %v2148_v11 = vmul.f32 %v3044_v7, %v2146_v9  ;;  %v2012_v14 = vmul.f32 %v3042_v1, %v2010_v13  ;;  %v2684_v9 = vld [vmem:[%s3145_s12 + $0xe] sm:$0x3] }
0x1228   : > { %2150 = vrot.lane.b32.xlu0 %v2148_v11, %s3077_s27  ;;  %2033 = vperm.xlu1 %2936, %v2670_v10   ;;  %v2424_v11 = vld [vmem:[%s3150_s15] sm:$0x3]  ;;  %s3477_s15 = scalar_lea.vmem %s3531_s6, %s2694_s29 }
0x1229   : > { %v2141_v15 = vpop.permute.xlu0 %2140 }
0x122a   : > { %v2143_v18 = vmul.f32 %v3044_v7, %v2141_v15 }
0x122c   : > { %2164 = vperm.xlu0 %2935, %v2677_v12  }
0x1296   : > { %v2020_v16 = vpop.permute.xlu1 %2019 }
0x1297   : > { %v2022_v17 = vadd.f32 %v2020_v16, %v2012_v14 }
0x1299   : > { %3045 = vtanh.f32 %v2022_v17 }
0x129a   : > { %v2151_v19 = vpop.permute.xlu0 %2150 }
0x129b   : > { %v2153_v20 = vadd.f32 %v2151_v19, %v2143_v18 }
0x129d   : > { %3047 = vtanh.f32 %v2153_v20 }
0x12a3   : > { %v3046_v21 = vpop.eup %3045 }
0x12a4   : > { %2025 = vrot.lane.b32.xlu1 %v3046_v21, %s3080_s30 }
0x12a7   : > { %v3048_v22 = vpop.eup %3047  ;;  %v2034_v23 = vpop.permute.xlu1 %2033 }
0x12a8   : > { %2156 = vrot.lane.b32.xlu0 %v3048_v22, %s3080_s30  ;;  %v2042_v30 = vmul.f32 %v2034_v23, %v2022_v17 }
0x12ab   : > { %v2165_v24 = vpop.permute.xlu0 %2164 }
0x12ac   : > { %v2173_v34 = vmul.f32 %v2165_v24, %v2153_v20 }
0x1316   : > { %v2026_v25 = vpop.permute.xlu1 %2025 }
0x1317   : > { %v2028_v26 = vmul.f32 %v3042_v1, %v2026_v25 }
0x1319   : > { %v2036_v27 = vmul.f32 %v2034_v23, %v2028_v26 }
0x131a   : > { %v2157_v28 = vpop.permute.xlu0 %2156 }
0x131b   : > { %v2159_v29 = vmul.f32 %v3044_v7, %v2157_v28  ;;  %2038 = vrot.lane.b32.xlu1 %v2036_v27, %s3081_s7 }
0x131d   : > { %v3429_v32 = vmul.f32 %v2165_v24, %v2159_v29 }
0x131f   : > { %2169 = vrot.lane.b32.xlu0 %v3429_v32, %s3081_s7  ;;  %2044 = vrot.lane.b32.xlu1 %v2042_v30, %s3082_s8 }
0x1323   : > { %2175 = vrot.lane.b32.xlu0 %v2173_v34, %s3082_s8 }
0x138d   : > { %v3435_v35 = vpop.permute.xlu1 %2038 }
0x138e   : > { %2041 = vst.msk [vmem:[#allocation2] sm:$0x3] %vm447_vm3, %v3435_v35 }
0x1391   : > { %v2170_v39 = vpop.permute.xlu0 %2169  ;;  %v2045_v3 = vpop.permute.xlu1 %2044 }
0x1392   : > { %2172 = vst.msk [vmem:[#allocation4] sm:$0x3] %vm447_vm3, %v2170_v39  ;;  %2047 = vst.msk [vmem:[#allocation3] sm:$0x3] %vm447_vm3, %v2045_v3 }
0x1395   : > { %v2176_v42 = vpop.permute.xlu0 %2175  ;;  %v2188_v44 = vld [vmem:[#allocation2] sm:$0x3] }
0x1396   : > { %2178 = vst.msk [vmem:[#allocation5] sm:$0x3] %vm447_vm3, %v2176_v42  ;;  %2860 = vmatmul.mubr.msk.f32.vlgmr.msra.gmra.mrb[14].mxu0 %vm332_vm2, %v2188_v44 }
0x1399   : > { %v2318_v45 = vld [vmem:[#allocation4] sm:$0x3]  ;;  %v2265_v8 = vld [vmem:[#allocation3] sm:$0x3] }
0x139a   : > { %2867 = vmatmul.mubr.msk.f32.vlgmr.msra.gmra.mrb[14].mxu1 %vm332_vm2, %v2318_v45 }
0x139d   : > { %v2395_v58 = vld [vmem:[#allocation5] sm:$0x3] }
0x1469   : > { %v2260_v47 = vpop.f32.mrb[14].mxu0 }
0x146a   : > { %v2264_v49 = vadd.f32 %v2681_v46, %v2260_v47  ;;  %v2861_v51 = vpop.f32.mrb[15].mxu0 }
0x146c   : > { %3049 = vtanh.f32 %v2264_v49  ;;  %v2683_v5 = vmul.f32 -1.442695, %v2264_v49 }
0x146d   : > { %v2390_v52 = vpop.f32.mrb[14].mxu1 }
0x146e   : > { %v2394_v53 = vadd.f32 %v2390_v52, %v2317_v4  ;;  %v2868_v54 = vpop.f32.mrb[15].mxu1 }
0x1470   : > { %3051 = vtanh.f32 %v2394_v53  ;;  %v2689_v59 = vmul.f32 -1.442695, %v2394_v53 }
0x1471   : > { %3053 = vpow2.f32 %v2683_v5 }
0x1472   : > { %3055 = vpow2.f32 %v2689_v59 }
0x1476   : > { %v3050_v55 = vpop.eup %3049 }
0x1477   : > { %2279 = vrot.lane.b32.xlu1 %v3050_v55, %s3079_s28 }
0x147a   : > { %v3052_v57 = vpop.eup %3051 }
0x147b   : > { %2409 = vrot.lane.b32.xlu0 %v3052_v57, %s3079_s28  ;;  %2274 = vrot.lane.b32.xlu1 %v2265_v8, %s3077_s27  ;;  %v3054_v60 = vpop.eup %3053 }
0x147c   : > { %v2269_v61 = vadd.f32 1.0, %v3054_v60  ;;  %v3056_v62 = vpop.eup %3055 }
0x147d   : > { %v2399_v63 = vadd.f32 1.0, %v3056_v62 }
0x147e   : > { %3057 = vrcp.f32 %v2269_v61 }
0x147f   : > { %2404 = vrot.lane.b32.xlu0 %v2395_v58, %s3077_s27  ;;  %3059 = vrcp.f32 %v2399_v63 }
0x1488   : > { %v3058_v0 = vpop.eup %3057 }
0x1489   : > { %v3060_v6 = vpop.eup %3059 }
0x14e9   : > { %v2280_v1 = vpop.permute.xlu1 %2279 }
0x14ea   : > { %v2282_v2 = vmul.f32 %v3058_v0, %v2280_v1 }
0x14ec   : > { %2284 = vrot.lane.b32.xlu1 %v2282_v2, %s3077_s27 }
0x14ed   : > { %v2410_v7 = vpop.permute.xlu0 %2409  ;;  %v2275_v12 = vpop.permute.xlu1 %2274 }
0x14ee   : > { %v2412_v10 = vmul.f32 %v3060_v6, %v2410_v7  ;;  %v2277_v13 = vmul.f32 %v3058_v0, %v2275_v12 }
0x14f0   : > { %2414 = vrot.lane.b32.xlu0 %v2412_v10, %s3077_s27  ;;  %2298 = vperm.xlu1 %2936, %v2684_v9  }
0x14f1   : > { %v2405_v14 = vpop.permute.xlu0 %2404 }
0x14f2   : > { %v2407_v17 = vmul.f32 %v3060_v6, %v2405_v14 }
0x14f4   : > { %2427 = vperm.xlu0 %2935, %v2424_v11  }
0x155e   : > { %v2285_v15 = vpop.permute.xlu1 %2284 }
0x155f   : > { %v2287_v16 = vadd.f32 %v2285_v15, %v2277_v13 }
0x1561   : > { %3061 = vtanh.f32 %v2287_v16 }
0x1562   : > { %v2415_v18 = vpop.permute.xlu0 %2414 }
0x1563   : > { %v2417_v19 = vadd.f32 %v2415_v18, %v2407_v17 }
0x1565   : > { %3063 = vtanh.f32 %v2417_v19 }
0x156b   : > { %v3062_v20 = vpop.eup %3061 }
0x156c   : > { %2290 = vrot.lane.b32.xlu1 %v3062_v20, %s3080_s30 }
0x156f   : > { %v3064_v21 = vpop.eup %3063  ;;  %v2299_v22 = vpop.permute.xlu1 %2298 }
0x1570   : > { %2420 = vrot.lane.b32.xlu0 %v3064_v21, %s3080_s30  ;;  %589 = vrot.lane.b32.xlu1 %v3202_v56, %s3079_s28  ;;  %v2307_v56 = vmul.f32 %v2299_v22, %v2287_v16 }
0x1573   : > { %v2428_v23 = vpop.permute.xlu0 %2427 }
0x1574   : > { %855 = vrot.lane.b32.xlu0 %v3243_v48, %s3079_s28  ;;  %1120 = vrot.lane.b32.xlu1 %v3279_v41, %s3079_s28  ;;  %v2436_v48 = vmul.f32 %v2428_v23, %v2417_v19 }
0x1578   : > { %1385 = vrot.lane.b32.xlu0 %v3315_v36, %s3079_s28  ;;  %1650 = vrot.lane.b32.xlu1 %v3351_v31, %s3079_s28 }
0x157c   : > { %1915 = vrot.lane.b32.xlu0 %v3397_v37, %s3079_s28  ;;  %2180 = vrot.lane.b32.xlu1 %v3429_v32, %s3079_s28 }
0x1580   : > { %2309 = vrot.lane.b32.xlu1 %v2307_v56, %s3082_s8 }
0x1584   : > { %2438 = vrot.lane.b32.xlu1 %v2436_v48, %s3082_s8 }
0x15de   : > { %v2291_v41 = vpop.permute.xlu1 %2290 }
0x15df   : > { %v2293_v36 = vmul.f32 %v3058_v0, %v2291_v41 }
0x15e1   : > { %v2301_v31 = vmul.f32 %v2299_v22, %v2293_v36 }
0x15e2   : > { %v2421_v37 = vpop.permute.xlu0 %2420  ;;  %v590_v24 = vpop.permute.xlu1 %589 }
0x15e3   : > { %v2423_v25 = vmul.f32 %v3060_v6, %v2421_v37  ;;  %2596 = vst.msk [vmem:[%s3477_s15 + $0xe] sm:$0x3] %vm594_vm4, %v590_v24  ;;  %2303 = vrot.lane.b32.xlu0 %v2301_v31, %s3081_s7 }
0x15e4   : > { %2603 = vst.msk [vmem:[%s3212_s14 + $0x2] sm:$0x3] %vm447_vm3, %v3249_v50 }
0x15e5   : > { %v2430_v26 = vmul.f32 %v2428_v23, %v2423_v25 }
0x15e6   : > { %v856_v27 = vpop.permute.xlu0 %855  ;;  %v1121_v28 = vpop.permute.xlu1 %1120 }
0x15e7   : > { %2610 = vst.msk [vmem:[%s3477_s15 + $0xc] sm:$0x3] %vm594_vm4, %v856_v27  ;;  %2432 = vrot.lane.b32.xlu0 %v2430_v26, %s3081_s7 }
0x15e8   : > { %2617 = vst.msk [vmem:[%s3212_s14 + $0x4] sm:$0x3] %vm447_vm3, %v3285_v43 }
0x15e9   : > { %2624 = vst.msk [vmem:[%s3477_s15 + $0xa] sm:$0x3] %vm594_vm4, %v1121_v28 }
0x15ea   : > { %2631 = vst.msk [vmem:[%s3212_s14 + $0x6] sm:$0x3] %vm447_vm3, %v3321_v38  ;;  %v1386_v29 = vpop.permute.xlu0 %1385  ;;  %v1651_v50 = vpop.permute.xlu1 %1650 }
0x15eb   : > { %2638 = vst.msk [vmem:[%s3477_s15 + $0x8] sm:$0x3] %vm594_vm4, %v1386_v29  ;;  %2442 = vrot.lane.b32.xlu0 %v2430_v26, %s3079_s28 }
0x15ec   : > { %2645 = vst.msk [vmem:[%s3212_s14 + $0x8] sm:$0x3] %vm447_vm3, %v3357_v33 }
0x15ed   : > { %2652 = vst.msk [vmem:[%s3477_s15 + $0x6] sm:$0x3] %vm594_vm4, %v1651_v50 }
0x15ee   : > { %2659 = vst.msk [vmem:[%s3212_s14 + $0xa] sm:$0x3] %vm447_vm3, %v3403_v40  ;;  %v1916_v43 = vpop.permute.xlu0 %1915  ;;  %v2181_v30 = vpop.permute.xlu1 %2180 }
0x15ef   : > { %2666 = vst.msk [vmem:[%s3477_s15 + $0x4] sm:$0x3] %vm594_vm4, %v1916_v43 }
0x15f0   : > { %2673 = vst.msk [vmem:[%s3212_s14 + $0xc] sm:$0x3] %vm447_vm3, %v3435_v35 }
0x15f1   : > { %2680 = vst.msk [vmem:[%s3477_s15 + $0x2] sm:$0x3] %vm594_vm4, %v2181_v30 }
0x15f2   : > { %v2310_v38 = vpop.permute.xlu1 %2309 }
0x15f3   : > { %2312 = vst.msk [vmem:[#allocation3] sm:$0x3] %vm447_vm3, %v2310_v38 }
0x15f6   : > { %v2439_v32 = vpop.permute.xlu1 %2438 }
0x15f7   : > { %2441 = vst.msk [vmem:[#allocation5] sm:$0x3] %vm447_vm3, %v2439_v32 }
0x1655   : > { %v2304_v33 = vpop.permute.xlu0 %2303 }
0x1656   : > { %2306 = vst.msk [vmem:[#allocation2] sm:$0x3] %vm447_vm3, %v2304_v33  ;;  %2687 = vst.msk [vmem:[%s3212_s14 + $0xe] sm:$0x3] %vm447_vm3, %v2304_v33 }
0x1659   : > { %v2433_v40 = vpop.permute.xlu0 %2432 }
0x165a   : > { %2435 = vst.msk [vmem:[#allocation4] sm:$0x3] %vm447_vm3, %v2433_v40 }
0x165d   : > { %v2443_v34 = vpop.permute.xlu0 %2442 }
0x165e   : > { %2447 = vst.msk [vmem:[%s3477_s15] sm:$0x3] %vm594_vm4, %v2443_v34 }
0x165f PF: > { %s16_s21 = sadd.s32 1, %s3071_s21  }
0x1660   : > { %p13_p6 = scmp.ge.s32.totalorder %s16_s21, 4  }
0x1662   :  { %15 = sbr.rel (!%p13_p6) target bundleno = 1 (0x1), region = 127 }

</bundles_post_ra>
